<compile_context>
chip_gen: v7x
topology: tpu7x:2x2x1
jax: 0.10.0
libtpu: 0.0.40
codegen_flags: <defaults>
</compile_context>

<pallas_src>
import jax
import jax.numpy as jnp
from jax import lax
from jax.experimental import pallas as pl
from jax.experimental.pallas import tpu as pltpu

INPUT_SIZE = 4
HIDDEN_SIZE = 32
NUM_LAYERS = 2
SEQ_LEN = 8
BATCH_TILE = 8          # batch rows per grid step; raise (e.g. 128) for large B

# ---- lane-dense parameter-slab layout: (SLAB_ROWS, 128) f32 -----------------
SLAB_LANES = 128
# rows 0:32  lanes   0:32   W_hh_l0^T
#            lanes  32:64   W_ih_l1^T
#            lanes  64:96   W_hh_l1^T
#            lane   96      fc.weight^T (column)   -> "W1ext" = lanes 64:128
L_WHH0 = 0
L_WIH1 = HIDDEN_SIZE
L_W1EXT = 2 * HIDDEN_SIZE
R_WIH0 = HIDDEN_SIZE            # rows 32:36, lanes 0:32  W_ih_l0^T
R_B0 = 40                       # row 40, lanes 0:32      b_ih_l0 + b_hh_l0
R_B1 = 41                       # row 41, lanes 0:32      b_ih_l1 + b_hh_l1
R_FCB = 42                      # row 42, all lanes       fc.bias (broadcast)
SLAB_ROWS = 48                  # padded to a multiple of 8

assert L_W1EXT + 2 * HIDDEN_SIZE <= SLAB_LANES
assert SEQ_LEN <= SLAB_LANES    # fc.bias row is broadcast across 128 lanes


def _rnn_kernel(x_ref, p_ref, out_ref):
    """x_ref: (Bt, S, I); p_ref: (SLAB_ROWS, 128) slab; out_ref: (Bt, S)."""
    H = HIDDEN_SIZE
    S = SEQ_LEN
    B = x_ref.shape[0]

    # Hoisted, static slices of the lane-dense slab (one full-width load each,
    # off the recurrent chain).
    wrows = p_ref[0:H, :]                             # (H, 128)
    whh0 = wrows[:, L_WHH0:L_WHH0 + H]                # (H, H)   W_hh_l0^T
    wih1 = wrows[:, L_WIH1:L_WIH1 + H]                # (H, H)   W_ih_l1^T
    w1ext = wrows[:, L_W1EXT:L_W1EXT + 2 * H]         # (H, 2H)  [W_hh_l1^T|fcw|0]
    wih0 = p_ref[R_WIH0:R_WIH0 + INPUT_SIZE, :][:, :H]  # (I, H)  W_ih_l0^T
    b0 = p_ref[R_B0:R_B0 + 1, :][:, :H]               # (1, H)
    b1 = p_ref[R_B1:R_B1 + 1, :][:, :H]               # (1, H)
    fcb = p_ref[R_FCB:R_FCB + 1, :][:, :S]            # (1, S)

    # Batched layer-0 input projection for ALL (batch, time) rows in one MXU
    # pass, off the recurrent critical path.
    x2 = x_ref[...].reshape(B * S, INPUT_SIZE)
    xw0 = jnp.dot(x2, wih0, preferred_element_type=jnp.float32)
    xw0 = xw0.reshape(B, S, H) + b0                   # (B, S, H)

    h0 = jnp.zeros((B, H), jnp.float32)
    h1 = jnp.zeros((B, H), jnp.float32)
    logit_cols = []

    # Fused 2-layer recurrence, fully unrolled (static indices everywhere).
    for t in range(S):
        # h1_{t-1} @ [W_hh_l1^T | fcw]: lanes 0:H feed the layer-1 update,
        # lane H is fc(h1_{t-1}) for free.  Independent of the new h0 below,
        # so this dot sits OFF the serial MXU->tanh chain.
        y1 = jnp.dot(h1, w1ext, preferred_element_type=jnp.float32)  # (B, 2H)
        if t > 0:
            logit_cols.append(y1[:, H:H + 1])         # logit of timestep t-1
        # Layer 0: h0 <- tanh(xw0[t] + h0 @ W_hh_l0^T)
        h0 = jnp.tanh(xw0[:, t, :] +
                      jnp.dot(h0, whh0, preferred_element_type=jnp.float32))
        # Layer 1: h1 <- tanh(h0 @ W_ih_l1^T + h1 @ W_hh_l1^T + b1)
        h1 = jnp.tanh(jnp.dot(h0, wih1, preferred_element_type=jnp.float32) +
                      y1[:, :H] + b1)

    # Last timestep's logit did not ride a recurrent dot; one extra small dot.
    y_last = jnp.dot(h1, w1ext, preferred_element_type=jnp.float32)
    logit_cols.append(y_last[:, H:H + 1])

    logits = jnp.concatenate(logit_cols, axis=1)      # (B, S)
    out_ref[...] = jax.nn.sigmoid(logits + fcb)


def rnn_model_forward(x, params_slab, *, batch_tile=BATCH_TILE):
    """x: (S, I) or (B, S, I) f32  ->  (S, 1) or (B, S, 1) f32."""
    squeeze = x.ndim == 2
    if squeeze:
        x = x[None]
    B = x.shape[0]
    assert x.shape[1:] == (SEQ_LEN, INPUT_SIZE)
    assert batch_tile % 8 == 0

    pad = (-B) % batch_tile
    if pad:
        x = jnp.concatenate(
            [x, jnp.zeros((pad, SEQ_LEN, INPUT_SIZE), x.dtype)], axis=0)
    bp = B + pad
    grid = (bp // batch_tile,)

    out = pl.pallas_call(
        _rnn_kernel,
        out_shape=jax.ShapeDtypeStruct((bp, SEQ_LEN), jnp.float32),
        grid=grid,
        in_specs=[
            # Per-chunk batch tile of sequences.
            pl.BlockSpec((batch_tile, SEQ_LEN, INPUT_SIZE),
                         lambda i: (i, 0, 0)),
            # Shared parameter slab: constant block index -> DMA'd once and
            # kept resident across grid steps.
            pl.BlockSpec((SLAB_ROWS, SLAB_LANES), lambda i: (0, 0)),
        ],
        out_specs=pl.BlockSpec((batch_tile, SEQ_LEN), lambda i: (i, 0)),
        compiler_params=pltpu.CompilerParams(
            dimension_semantics=("parallel",)),   # v7x: split chunks across TCs
    )(x, params_slab)

    out = out[:B, :, None]                            # (B, S, 1)
    return out[0] if squeeze else out


def init_params(key):
    """Deterministic init matching PyTorch's U(-1/sqrt(H), 1/sqrt(H)) scheme."""
    bound = 1.0 / float(HIDDEN_SIZE) ** 0.5
    ks = jax.random.split(key, 10)

    def u(k, shape):
        return jax.random.uniform(k, shape, jnp.float32, -bound, bound)

    return dict(
        wih0=u(ks[0], (HIDDEN_SIZE, INPUT_SIZE)),     # W_ih_l0
        whh0=u(ks[1], (HIDDEN_SIZE, HIDDEN_SIZE)),    # W_hh_l0
        b0=u(ks[2], (HIDDEN_SIZE,)) + u(ks[3], (HIDDEN_SIZE,)),
        wih1=u(ks[4], (HIDDEN_SIZE, HIDDEN_SIZE)),    # W_ih_l1
        whh1=u(ks[5], (HIDDEN_SIZE, HIDDEN_SIZE)),    # W_hh_l1
        b1=u(ks[6], (HIDDEN_SIZE,)) + u(ks[7], (HIDDEN_SIZE,)),
        fcw=u(ks[8], (1, HIDDEN_SIZE)),               # fc.weight
        fcb=u(ks[9], (1,)),                           # fc.bias
    )


def pack_params(p):
    """Glue: pre-transpose weights and pack everything into one lane-dense slab."""
    H = HIDDEN_SIZE
    slab = jnp.zeros((SLAB_ROWS, SLAB_LANES), jnp.float32)
    slab = slab.at[0:H, L_WHH0:L_WHH0 + H].set(p["whh0"].T)
    slab = slab.at[0:H, L_WIH1:L_WIH1 + H].set(p["wih1"].T)
    slab = slab.at[0:H, L_W1EXT:L_W1EXT + H].set(p["whh1"].T)
    slab = slab.at[0:H, L_W1EXT + H].set(p["fcw"][0])          # fc weight column
    slab = slab.at[R_WIH0:R_WIH0 + INPUT_SIZE, 0:H].set(p["wih0"].T)
    slab = slab.at[R_B0, 0:H].set(p["b0"])
    slab = slab.at[R_B1, 0:H].set(p["b1"])
    slab = slab.at[R_FCB, :].set(jnp.full((SLAB_LANES,), p["fcb"][0],
                                          jnp.float32))
    return slab


def reference_forward(x, p):
    """Pure-JAX reference for ONE sequence: nn.RNN(tanh,2) + Linear + Sigmoid."""
    def run_layer(inp, wih, whh, b):
        xw = inp @ wih.T + b                                   # (S, H)

        def step(h, xw_row):
            h_new = jnp.tanh(xw_row + h @ whh.T)
            return h_new, h_new

        _, outs = lax.scan(step, jnp.zeros((HIDDEN_SIZE,), jnp.float32), xw)
        return outs

    h = run_layer(x, p["wih0"], p["whh0"], p["b0"])
    h = run_layer(h, p["wih1"], p["whh1"], p["b1"])
    logits = h @ p["fcw"].T + p["fcb"]                         # (S, 1)
    return jax.nn.sigmoid(logits)


if __name__ == "__main__":
    key = jax.random.PRNGKey(0)
    k_x, k_p = jax.random.split(key)

    B = 16
    x_batch = jax.random.normal(k_x, (B, SEQ_LEN, INPUT_SIZE), jnp.float32)
    params = init_params(k_p)
    slab = pack_params(params)

    # Batched path: 2 batch chunks of 8 -> grid=(2,), "parallel" over chunks.
    out_b = rnn_model_forward(x_batch, slab)
    out_b = jax.block_until_ready(out_b)
    assert out_b.shape == (B, SEQ_LEN, 1)

    ref_b = jax.vmap(lambda xs: reference_forward(xs, params))(x_batch)
    assert jnp.allclose(out_b, ref_b, atol=1e-5, rtol=1e-5), (out_b, ref_b)

    # Module-exact unbatched call: (S, I) -> (S, 1).
    out_1 = jax.block_until_ready(rnn_model_forward(x_batch[0], slab))
    assert out_1.shape == (SEQ_LEN, 1)
    assert jnp.allclose(out_1, ref_b[0], atol=1e-5, rtol=1e-5), (out_1, ref_b[0])

    print("KERNEL_OK")
</pallas_src>

<mosaic_0001>
module attributes {stable_mosaic.version = 11 : i64} {
  func.func @_rnn_kernel(%arg0: i32, %arg1: memref<8x8x4xf32, #tpu.memory_space<vmem>>, %arg2: memref<48x128xf32, #tpu.memory_space<vmem>>, %arg3: memref<8x8xf32, #tpu.memory_space<vmem>>) attributes {dimension_semantics = [#tpu.dimension_semantics<parallel>], iteration_bounds = array<i64: 2>, scalar_prefetch = 0 : i64, scratch_operands = 0 : i64, tpu.core_type = #tpu.core_type<tc>, window_params = [{transform_indices = @transform_0, window_bounds = array<i64: 8, 8, 4>}, {pipeline_mode = #tpu.pipeline_mode<synchronous>, transform_indices = @transform_1, window_bounds = array<i64: 48, 128>}, {transform_indices = @transform_2, window_bounds = array<i64: 8, 8>}]} {
    %c0 = arith.constant 0 : index
    %c0_0 = arith.constant 0 : index
    %0 = vector.load %arg2[%c0, %c0_0] : memref<48x128xf32, #tpu.memory_space<vmem>>, vector<32x128xf32>
    %1 = vector.extract_strided_slice %0 {offsets = [0, 0], sizes = [32, 32], strides = [1, 1]} : vector<32x128xf32> to vector<32x32xf32>
    %2 = vector.extract_strided_slice %0 {offsets = [0, 32], sizes = [32, 32], strides = [1, 1]} : vector<32x128xf32> to vector<32x32xf32>
    %3 = vector.extract_strided_slice %0 {offsets = [0, 64], sizes = [32, 64], strides = [1, 1]} : vector<32x128xf32> to vector<32x64xf32>
    %c32 = arith.constant 32 : index
    %c0_1 = arith.constant 0 : index
    %4 = vector.load %arg2[%c32, %c0_1] : memref<48x128xf32, #tpu.memory_space<vmem>>, vector<4x128xf32>
    %5 = vector.extract_strided_slice %4 {offsets = [0, 0], sizes = [4, 32], strides = [1, 1]} : vector<4x128xf32> to vector<4x32xf32>
    %c40 = arith.constant 40 : index
    %c0_2 = arith.constant 0 : index
    %6 = vector.load %arg2[%c40, %c0_2] : memref<48x128xf32, #tpu.memory_space<vmem>>, vector<1x128xf32>
    %7 = vector.extract_strided_slice %6 {offsets = [0, 0], sizes = [1, 32], strides = [1, 1]} : vector<1x128xf32> to vector<1x32xf32>
    %c41 = arith.constant 41 : index
    %c0_3 = arith.constant 0 : index
    %8 = vector.load %arg2[%c41, %c0_3] : memref<48x128xf32, #tpu.memory_space<vmem>>, vector<1x128xf32>
    %9 = vector.extract_strided_slice %8 {offsets = [0, 0], sizes = [1, 32], strides = [1, 1]} : vector<1x128xf32> to vector<1x32xf32>
    %c42 = arith.constant 42 : index
    %c0_4 = arith.constant 0 : index
    %10 = vector.load %arg2[%c42, %c0_4] : memref<48x128xf32, #tpu.memory_space<vmem>>, vector<1x128xf32>
    %11 = vector.extract_strided_slice %10 {offsets = [0, 0], sizes = [1, 8], strides = [1, 1]} : vector<1x128xf32> to vector<1x8xf32>
    %c0_5 = arith.constant 0 : index
    %c0_6 = arith.constant 0 : index
    %c0_7 = arith.constant 0 : index
    %12 = vector.load %arg1[%c0_5, %c0_6, %c0_7] : memref<8x8x4xf32, #tpu.memory_space<vmem>>, vector<8x8x4xf32>
    %13 = vector.shape_cast %12 : vector<8x8x4xf32> to vector<64x4xf32>
    %cst = arith.constant dense<0.000000e+00> : vector<64x32xf32>
    %14 = tpu.matmul %13, %5, %cst {dimension_numbers = #tpu.dot_dimension_numbers<[1], [0], [0], [1], [0, 0, 1, 1], [], []>} : vector<64x4xf32>, vector<4x32xf32>, vector<64x32xf32> -> vector<64x32xf32>
    %15 = vector.shape_cast %14 : vector<64x32xf32> to vector<8x8x32xf32>
    %16 = vector.shape_cast %7 : vector<1x32xf32> to vector<1x1x32xf32>
    %17 = vector.broadcast %16 : vector<1x1x32xf32> to vector<8x8x32xf32>
    %18 = arith.addf %15, %17 : vector<8x8x32xf32>
    %cst_8 = arith.constant 0.000000e+00 : f32
    %19 = vector.broadcast %cst_8 : f32 to vector<8x32xf32>
    %cst_9 = arith.constant 0.000000e+00 : f32
    %20 = vector.broadcast %cst_9 : f32 to vector<8x32xf32>
    %cst_10 = arith.constant dense<0.000000e+00> : vector<8x64xf32>
    %21 = tpu.matmul %20, %3, %cst_10 {dimension_numbers = #tpu.dot_dimension_numbers<[1], [0], [0], [1], [0, 0, 1, 1], [], []>} : vector<8x32xf32>, vector<32x64xf32>, vector<8x64xf32> -> vector<8x64xf32>
    %22 = vector.extract_strided_slice %18 {offsets = [0, 0, 0], sizes = [8, 1, 32], strides = [1, 1, 1]} : vector<8x8x32xf32> to vector<8x1x32xf32>
    %23 = vector.shape_cast %22 : vector<8x1x32xf32> to vector<8x32xf32>
    %cst_11 = arith.constant dense<0.000000e+00> : vector<8x32xf32>
    %24 = tpu.matmul %19, %1, %cst_11 {dimension_numbers = #tpu.dot_dimension_numbers<[1], [0], [0], [1], [0, 0, 1, 1], [], []>} : vector<8x32xf32>, vector<32x32xf32>, vector<8x32xf32> -> vector<8x32xf32>
    %25 = arith.addf %23, %24 : vector<8x32xf32>
    %26 = math.tanh %25 : vector<8x32xf32>
    %cst_12 = arith.constant dense<0.000000e+00> : vector<8x32xf32>
    %27 = tpu.matmul %26, %2, %cst_12 {dimension_numbers = #tpu.dot_dimension_numbers<[1], [0], [0], [1], [0, 0, 1, 1], [], []>} : vector<8x32xf32>, vector<32x32xf32>, vector<8x32xf32> -> vector<8x32xf32>
    %28 = vector.extract_strided_slice %21 {offsets = [0, 0], sizes = [8, 32], strides = [1, 1]} : vector<8x64xf32> to vector<8x32xf32>
    %29 = arith.addf %27, %28 : vector<8x32xf32>
    %30 = vector.broadcast %9 : vector<1x32xf32> to vector<8x32xf32>
    %31 = arith.addf %29, %30 : vector<8x32xf32>
    %32 = math.tanh %31 : vector<8x32xf32>
    %cst_13 = arith.constant dense<0.000000e+00> : vector<8x64xf32>
    %33 = tpu.matmul %32, %3, %cst_13 {dimension_numbers = #tpu.dot_dimension_numbers<[1], [0], [0], [1], [0, 0, 1, 1], [], []>} : vector<8x32xf32>, vector<32x64xf32>, vector<8x64xf32> -> vector<8x64xf32>
    %34 = vector.extract_strided_slice %33 {offsets = [0, 32], sizes = [8, 1], strides = [1, 1]} : vector<8x64xf32> to vector<8x1xf32>
    %35 = vector.extract_strided_slice %18 {offsets = [0, 1, 0], sizes = [8, 1, 32], strides = [1, 1, 1]} : vector<8x8x32xf32> to vector<8x1x32xf32>
    %36 = vector.shape_cast %35 : vector<8x1x32xf32> to vector<8x32xf32>
    %cst_14 = arith.constant dense<0.000000e+00> : vector<8x32xf32>
    %37 = tpu.matmul %26, %1, %cst_14 {dimension_numbers = #tpu.dot_dimension_numbers<[1], [0], [0], [1], [0, 0, 1, 1], [], []>} : vector<8x32xf32>, vector<32x32xf32>, vector<8x32xf32> -> vector<8x32xf32>
    %38 = arith.addf %36, %37 : vector<8x32xf32>
    %39 = math.tanh %38 : vector<8x32xf32>
    %cst_15 = arith.constant dense<0.000000e+00> : vector<8x32xf32>
    %40 = tpu.matmul %39, %2, %cst_15 {dimension_numbers = #tpu.dot_dimension_numbers<[1], [0], [0], [1], [0, 0, 1, 1], [], []>} : vector<8x32xf32>, vector<32x32xf32>, vector<8x32xf32> -> vector<8x32xf32>
    %41 = vector.extract_strided_slice %33 {offsets = [0, 0], sizes = [8, 32], strides = [1, 1]} : vector<8x64xf32> to vector<8x32xf32>
    %42 = arith.addf %40, %41 : vector<8x32xf32>
    %43 = vector.broadcast %9 : vector<1x32xf32> to vector<8x32xf32>
    %44 = arith.addf %42, %43 : vector<8x32xf32>
    %45 = math.tanh %44 : vector<8x32xf32>
    %cst_16 = arith.constant dense<0.000000e+00> : vector<8x64xf32>
    %46 = tpu.matmul %45, %3, %cst_16 {dimension_numbers = #tpu.dot_dimension_numbers<[1], [0], [0], [1], [0, 0, 1, 1], [], []>} : vector<8x32xf32>, vector<32x64xf32>, vector<8x64xf32> -> vector<8x64xf32>
    %47 = vector.extract_strided_slice %46 {offsets = [0, 32], sizes = [8, 1], strides = [1, 1]} : vector<8x64xf32> to vector<8x1xf32>
    %48 = vector.extract_strided_slice %18 {offsets = [0, 2, 0], sizes = [8, 1, 32], strides = [1, 1, 1]} : vector<8x8x32xf32> to vector<8x1x32xf32>
    %49 = vector.shape_cast %48 : vector<8x1x32xf32> to vector<8x32xf32>
    %cst_17 = arith.constant dense<0.000000e+00> : vector<8x32xf32>
    %50 = tpu.matmul %39, %1, %cst_17 {dimension_numbers = #tpu.dot_dimension_numbers<[1], [0], [0], [1], [0, 0, 1, 1], [], []>} : vector<8x32xf32>, vector<32x32xf32>, vector<8x32xf32> -> vector<8x32xf32>
    %51 = arith.addf %49, %50 : vector<8x32xf32>
    %52 = math.tanh %51 : vector<8x32xf32>
    %cst_18 = arith.constant dense<0.000000e+00> : vector<8x32xf32>
    %53 = tpu.matmul %52, %2, %cst_18 {dimension_numbers = #tpu.dot_dimension_numbers<[1], [0], [0], [1], [0, 0, 1, 1], [], []>} : vector<8x32xf32>, vector<32x32xf32>, vector<8x32xf32> -> vector<8x32xf32>
    %54 = vector.extract_strided_slice %46 {offsets = [0, 0], sizes = [8, 32], strides = [1, 1]} : vector<8x64xf32> to vector<8x32xf32>
    %55 = arith.addf %53, %54 : vector<8x32xf32>
    %56 = vector.broadcast %9 : vector<1x32xf32> to vector<8x32xf32>
    %57 = arith.addf %55, %56 : vector<8x32xf32>
    %58 = math.tanh %57 : vector<8x32xf32>
    %cst_19 = arith.constant dense<0.000000e+00> : vector<8x64xf32>
    %59 = tpu.matmul %58, %3, %cst_19 {dimension_numbers = #tpu.dot_dimension_numbers<[1], [0], [0], [1], [0, 0, 1, 1], [], []>} : vector<8x32xf32>, vector<32x64xf32>, vector<8x64xf32> -> vector<8x64xf32>
    %60 = vector.extract_strided_slice %59 {offsets = [0, 32], sizes = [8, 1], strides = [1, 1]} : vector<8x64xf32> to vector<8x1xf32>
    %61 = vector.extract_strided_slice %18 {offsets = [0, 3, 0], sizes = [8, 1, 32], strides = [1, 1, 1]} : vector<8x8x32xf32> to vector<8x1x32xf32>
    %62 = vector.shape_cast %61 : vector<8x1x32xf32> to vector<8x32xf32>
    %cst_20 = arith.constant dense<0.000000e+00> : vector<8x32xf32>
    %63 = tpu.matmul %52, %1, %cst_20 {dimension_numbers = #tpu.dot_dimension_numbers<[1], [0], [0], [1], [0, 0, 1, 1], [], []>} : vector<8x32xf32>, vector<32x32xf32>, vector<8x32xf32> -> vector<8x32xf32>
    %64 = arith.addf %62, %63 : vector<8x32xf32>
    %65 = math.tanh %64 : vector<8x32xf32>
    %cst_21 = arith.constant dense<0.000000e+00> : vector<8x32xf32>
    %66 = tpu.matmul %65, %2, %cst_21 {dimension_numbers = #tpu.dot_dimension_numbers<[1], [0], [0], [1], [0, 0, 1, 1], [], []>} : vector<8x32xf32>, vector<32x32xf32>, vector<8x32xf32> -> vector<8x32xf32>
    %67 = vector.extract_strided_slice %59 {offsets = [0, 0], sizes = [8, 32], strides = [1, 1]} : vector<8x64xf32> to vector<8x32xf32>
    %68 = arith.addf %66, %67 : vector<8x32xf32>
    %69 = vector.broadcast %9 : vector<1x32xf32> to vector<8x32xf32>
    %70 = arith.addf %68, %69 : vector<8x32xf32>
    %71 = math.tanh %70 : vector<8x32xf32>
    %cst_22 = arith.constant dense<0.000000e+00> : vector<8x64xf32>
    %72 = tpu.matmul %71, %3, %cst_22 {dimension_numbers = #tpu.dot_dimension_numbers<[1], [0], [0], [1], [0, 0, 1, 1], [], []>} : vector<8x32xf32>, vector<32x64xf32>, vector<8x64xf32> -> vector<8x64xf32>
    %73 = vector.extract_strided_slice %72 {offsets = [0, 32], sizes = [8, 1], strides = [1, 1]} : vector<8x64xf32> to vector<8x1xf32>
    %74 = vector.extract_strided_slice %18 {offsets = [0, 4, 0], sizes = [8, 1, 32], strides = [1, 1, 1]} : vector<8x8x32xf32> to vector<8x1x32xf32>
    %75 = vector.shape_cast %74 : vector<8x1x32xf32> to vector<8x32xf32>
    %cst_23 = arith.constant dense<0.000000e+00> : vector<8x32xf32>
    %76 = tpu.matmul %65, %1, %cst_23 {dimension_numbers = #tpu.dot_dimension_numbers<[1], [0], [0], [1], [0, 0, 1, 1], [], []>} : vector<8x32xf32>, vector<32x32xf32>, vector<8x32xf32> -> vector<8x32xf32>
    %77 = arith.addf %75, %76 : vector<8x32xf32>
    %78 = math.tanh %77 : vector<8x32xf32>
    %cst_24 = arith.constant dense<0.000000e+00> : vector<8x32xf32>
    %79 = tpu.matmul %78, %2, %cst_24 {dimension_numbers = #tpu.dot_dimension_numbers<[1], [0], [0], [1], [0, 0, 1, 1], [], []>} : vector<8x32xf32>, vector<32x32xf32>, vector<8x32xf32> -> vector<8x32xf32>
    %80 = vector.extract_strided_slice %72 {offsets = [0, 0], sizes = [8, 32], strides = [1, 1]} : vector<8x64xf32> to vector<8x32xf32>
    %81 = arith.addf %79, %80 : vector<8x32xf32>
    %82 = vector.broadcast %9 : vector<1x32xf32> to vector<8x32xf32>
    %83 = arith.addf %81, %82 : vector<8x32xf32>
    %84 = math.tanh %83 : vector<8x32xf32>
    %cst_25 = arith.constant dense<0.000000e+00> : vector<8x64xf32>
    %85 = tpu.matmul %84, %3, %cst_25 {dimension_numbers = #tpu.dot_dimension_numbers<[1], [0], [0], [1], [0, 0, 1, 1], [], []>} : vector<8x32xf32>, vector<32x64xf32>, vector<8x64xf32> -> vector<8x64xf32>
    %86 = vector.extract_strided_slice %85 {offsets = [0, 32], sizes = [8, 1], strides = [1, 1]} : vector<8x64xf32> to vector<8x1xf32>
    %87 = vector.extract_strided_slice %18 {offsets = [0, 5, 0], sizes = [8, 1, 32], strides = [1, 1, 1]} : vector<8x8x32xf32> to vector<8x1x32xf32>
    %88 = vector.shape_cast %87 : vector<8x1x32xf32> to vector<8x32xf32>
    %cst_26 = arith.constant dense<0.000000e+00> : vector<8x32xf32>
    %89 = tpu.matmul %78, %1, %cst_26 {dimension_numbers = #tpu.dot_dimension_numbers<[1], [0], [0], [1], [0, 0, 1, 1], [], []>} : vector<8x32xf32>, vector<32x32xf32>, vector<8x32xf32> -> vector<8x32xf32>
    %90 = arith.addf %88, %89 : vector<8x32xf32>
    %91 = math.tanh %90 : vector<8x32xf32>
    %cst_27 = arith.constant dense<0.000000e+00> : vector<8x32xf32>
    %92 = tpu.matmul %91, %2, %cst_27 {dimension_numbers = #tpu.dot_dimension_numbers<[1], [0], [0], [1], [0, 0, 1, 1], [], []>} : vector<8x32xf32>, vector<32x32xf32>, vector<8x32xf32> -> vector<8x32xf32>
    %93 = vector.extract_strided_slice %85 {offsets = [0, 0], sizes = [8, 32], strides = [1, 1]} : vector<8x64xf32> to vector<8x32xf32>
    %94 = arith.addf %92, %93 : vector<8x32xf32>
    %95 = vector.broadcast %9 : vector<1x32xf32> to vector<8x32xf32>
    %96 = arith.addf %94, %95 : vector<8x32xf32>
    %97 = math.tanh %96 : vector<8x32xf32>
    %cst_28 = arith.constant dense<0.000000e+00> : vector<8x64xf32>
    %98 = tpu.matmul %97, %3, %cst_28 {dimension_numbers = #tpu.dot_dimension_numbers<[1], [0], [0], [1], [0, 0, 1, 1], [], []>} : vector<8x32xf32>, vector<32x64xf32>, vector<8x64xf32> -> vector<8x64xf32>
    %99 = vector.extract_strided_slice %98 {offsets = [0, 32], sizes = [8, 1], strides = [1, 1]} : vector<8x64xf32> to vector<8x1xf32>
    %100 = vector.extract_strided_slice %18 {offsets = [0, 6, 0], sizes = [8, 1, 32], strides = [1, 1, 1]} : vector<8x8x32xf32> to vector<8x1x32xf32>
    %101 = vector.shape_cast %100 : vector<8x1x32xf32> to vector<8x32xf32>
    %cst_29 = arith.constant dense<0.000000e+00> : vector<8x32xf32>
    %102 = tpu.matmul %91, %1, %cst_29 {dimension_numbers = #tpu.dot_dimension_numbers<[1], [0], [0], [1], [0, 0, 1, 1], [], []>} : vector<8x32xf32>, vector<32x32xf32>, vector<8x32xf32> -> vector<8x32xf32>
    %103 = arith.addf %101, %102 : vector<8x32xf32>
    %104 = math.tanh %103 : vector<8x32xf32>
    %cst_30 = arith.constant dense<0.000000e+00> : vector<8x32xf32>
    %105 = tpu.matmul %104, %2, %cst_30 {dimension_numbers = #tpu.dot_dimension_numbers<[1], [0], [0], [1], [0, 0, 1, 1], [], []>} : vector<8x32xf32>, vector<32x32xf32>, vector<8x32xf32> -> vector<8x32xf32>
    %106 = vector.extract_strided_slice %98 {offsets = [0, 0], sizes = [8, 32], strides = [1, 1]} : vector<8x64xf32> to vector<8x32xf32>
    %107 = arith.addf %105, %106 : vector<8x32xf32>
    %108 = vector.broadcast %9 : vector<1x32xf32> to vector<8x32xf32>
    %109 = arith.addf %107, %108 : vector<8x32xf32>
    %110 = math.tanh %109 : vector<8x32xf32>
    %cst_31 = arith.constant dense<0.000000e+00> : vector<8x64xf32>
    %111 = tpu.matmul %110, %3, %cst_31 {dimension_numbers = #tpu.dot_dimension_numbers<[1], [0], [0], [1], [0, 0, 1, 1], [], []>} : vector<8x32xf32>, vector<32x64xf32>, vector<8x64xf32> -> vector<8x64xf32>
    %112 = vector.extract_strided_slice %111 {offsets = [0, 32], sizes = [8, 1], strides = [1, 1]} : vector<8x64xf32> to vector<8x1xf32>
    %113 = vector.extract_strided_slice %18 {offsets = [0, 7, 0], sizes = [8, 1, 32], strides = [1, 1, 1]} : vector<8x8x32xf32> to vector<8x1x32xf32>
    %114 = vector.shape_cast %113 : vector<8x1x32xf32> to vector<8x32xf32>
    %cst_32 = arith.constant dense<0.000000e+00> : vector<8x32xf32>
    %115 = tpu.matmul %104, %1, %cst_32 {dimension_numbers = #tpu.dot_dimension_numbers<[1], [0], [0], [1], [0, 0, 1, 1], [], []>} : vector<8x32xf32>, vector<32x32xf32>, vector<8x32xf32> -> vector<8x32xf32>
    %116 = arith.addf %114, %115 : vector<8x32xf32>
    %117 = math.tanh %116 : vector<8x32xf32>
    %cst_33 = arith.constant dense<0.000000e+00> : vector<8x32xf32>
    %118 = tpu.matmul %117, %2, %cst_33 {dimension_numbers = #tpu.dot_dimension_numbers<[1], [0], [0], [1], [0, 0, 1, 1], [], []>} : vector<8x32xf32>, vector<32x32xf32>, vector<8x32xf32> -> vector<8x32xf32>
    %119 = vector.extract_strided_slice %111 {offsets = [0, 0], sizes = [8, 32], strides = [1, 1]} : vector<8x64xf32> to vector<8x32xf32>
    %120 = arith.addf %118, %119 : vector<8x32xf32>
    %121 = vector.broadcast %9 : vector<1x32xf32> to vector<8x32xf32>
    %122 = arith.addf %120, %121 : vector<8x32xf32>
    %123 = math.tanh %122 : vector<8x32xf32>
    %cst_34 = arith.constant dense<0.000000e+00> : vector<8x64xf32>
    %124 = tpu.matmul %123, %3, %cst_34 {dimension_numbers = #tpu.dot_dimension_numbers<[1], [0], [0], [1], [0, 0, 1, 1], [], []>} : vector<8x32xf32>, vector<32x64xf32>, vector<8x64xf32> -> vector<8x64xf32>
    %125 = vector.extract_strided_slice %124 {offsets = [0, 32], sizes = [8, 1], strides = [1, 1]} : vector<8x64xf32> to vector<8x1xf32>
    %126 = tpu.concatenate %34, %47, %60, %73, %86, %99, %112, %125 in 1 : vector<8x1xf32>, vector<8x1xf32>, vector<8x1xf32>, vector<8x1xf32>, vector<8x1xf32>, vector<8x1xf32>, vector<8x1xf32>, vector<8x1xf32> -> vector<8x8xf32>
    %127 = vector.broadcast %11 : vector<1x8xf32> to vector<8x8xf32>
    %128 = arith.addf %126, %127 : vector<8x8xf32>
    %129 = arith.negf %128 : vector<8x8xf32>
    %130 = math.exp %129 : vector<8x8xf32>
    %cst_35 = arith.constant 1.000000e+00 : f32
    %131 = vector.broadcast %cst_35 : f32 to vector<8x8xf32>
    %132 = arith.addf %131, %130 : vector<8x8xf32>
    %133 = arith.divf %131, %132 : vector<8x8xf32>
    %c0_36 = arith.constant 0 : index
    %c0_37 = arith.constant 0 : index
    %134 = vector.load %arg3[%c0_36, %c0_37] : memref<8x8xf32, #tpu.memory_space<vmem>>, vector<8x8xf32>
    tpu.vector_store %arg3[%c0_36, %c0_37], %133 {strides = array<i32>} : memref<8x8xf32, #tpu.memory_space<vmem>>, vector<8x8xf32>,
    return
  }
  func.func @transform_0(%arg0: i32) -> (i32, i32, i32) {
    %c0_i32 = arith.constant 0 : i32
    %c0_i32_0 = arith.constant 0 : i32
    %c0_i32_1 = arith.constant 0 : i32
    return %arg0, %c0_i32, %c0_i32_0 : i32, i32, i32
  }
  func.func @transform_1(%arg0: i32) -> (i32, i32) {
    %c0_i32 = arith.constant 0 : i32
    %c0_i32_0 = arith.constant 0 : i32
    %c0_i32_1 = arith.constant 0 : i32
    return %c0_i32, %c0_i32_0 : i32, i32
  }
  func.func @transform_2(%arg0: i32) -> (i32, i32) {
    %c0_i32 = arith.constant 0 : i32
    %c0_i32_0 = arith.constant 0 : i32
    return %arg0, %c0_i32 : i32, i32
  }
}

</mosaic_0001>

<bundles_post_ra>
// kernel: tpu_custom_call.1
= control target key start
LH: loop header
LB: loop body
LE: loop exit
PB: predicated region body
PF: predicated region fallthrough
CT: control target
= control target key end

     0   :  { %s3541_s9 = smov 0   ;;  %s3937_s0 = inlined_call_operand.vmem [shape: f32[16,8,4], index: 0, kind: input, shape index: {}]   ;;  %s3938_s1 = inlined_call_operand.vmem [shape: f32[48,128], index: 1, kind: input, shape index: {}]   ;;  %s3939_s2 = inlined_call_operand.vmem [shape: f32[16,8], index: 2, kind: output, shape index: {}]  }
   0x1 LB: > { %s3547_s10 = sadd.s32 4294967295, %s3512_s9   ;;  %p2702_p0 = scmp.ge.s32.totalorder %s3512_s9, 1  ;;  %s3512_s9 = sphi %s3541_s9, %s12_s9  }
   0x2   : > { %p113_p1 = scmp.lt.s32.totalorder %s3512_s9, 3 }
   0x4   : > { %p114_p2 = pnand %p2702_p0, %p113_p1 }
   0x5   : > { %v144_v0 = vld [vmem:[%s3938_s1] sm:$0xff] (!%p114_p2)  ;;  %v145_v1 = vld [vmem:[%s3938_s1 + $0x8] sm:$0xff] (!%p114_p2)  ;;  %v146_v2 = vld [vmem:[%s3938_s1 + $0x10] sm:$0xff] (!%p114_p2)  ;;  %vm185_vm0 = vcmask (!%p114_p2), 1043456   ;;  %v3514_v6 = vmov (!%p114_p2), 0.0|0.0   ;;  %s2703_s21 = sshll.u32 (!%p114_p2), %s3547_s10, 3 }
   0x6   : > { %117 = sbr.rel (%p114_p2) target bundleno = 2676 (0xa74), region = 28  ;;  %v3337_v3 = vpack.i.bf16 (!%p114_p2), %v145_v1, %v144_v0  ;;  %v3560_v4 = vpack.c.bf16 (!%p114_p2), %v145_v1, %v144_v0  ;;  %v147_v5 = vld [vmem:[%s3938_s1 + $0x18] sm:$0xff] (!%p114_p2)  ;;  %3167 = vmatprep.subr.bf16.mxu1 (!%p114_p2), %v3514_v6  ;;  %v148_v7 = vld [vmem:[%s3938_s1 + $0x20] sm:$0xf] (!%p114_p2)  ;;  %p135_p3 = scmp.lt.s32.totalorder (!%p114_p2), %s2703_s21, 15  ;;  %vm3516_vm1 = vmmov (!%p114_p2), 0  }
   0x7   : > { %v3570_v8 = vpack.c.bf16 (!%p114_p2), %v147_v5, %v146_v2  ;;  %2878 = vmatprep.subr.msk.mxu0 (!%p114_p2), %vm185_vm0, %v148_v7  ;;  %s3515_s22 = smov (!%p114_p2), 64   ;;  %v3342_v9 = vpack.i.bf16 (!%p114_p2), %v147_v5, %v146_v2  ;;  %v3517_v10 = vmov (!%p114_p2), 0.0   ;;  %vm160_vm2 = vcmask (!%p114_p2), 31744   ;;  %s3518_s27 = smov (!%p114_p2), 96   ;;  %v2715_v45 = vld [vmem:[%s3938_s1 + $0x28] ss:$0 sm:$0xff] (!%p114_p2) }
   0x8   : > { %3338 = vrot.lane.b32.xlu0 (!%p114_p2), %v3337_v3, %s3515_s22  ;;  %2879 = vmatpush3.msk.msra.mxu0 (!%p114_p2), %vm185_vm0, %v148_v7  ;;  %vm507_vm3 = vcmask (!%p114_p2), 1041409   ;;  %vm510_vm4 = vcmask (!%p114_p2), 1042434   ;;  %vm513_vm5 = vcmask (!%p114_p2), 1043459   ;;  %vm516_vm6 = vcmask (!%p114_p2), 1044484   ;;  %s3519_s4 = smov (!%p114_p2), 97   ;;  %s3520_s5 = smov (!%p114_p2), 98  }
   0x9   : > { %2900 = vmatprep.mubr.msk.f32.mxu1 (!%p114_p2), %vm3516_vm1, %v3517_v10  ;;  %3179 = vmatprep.subr.bf16.mxu0 (!%p114_p2), %v3514_v6  ;;  %vm519_vm7 = vcmask (!%p114_p2), 1045509   ;;  %vm522_vm8 = vcmask (!%p114_p2), 1046534   ;;  %vm525_vm9 = vcmask (!%p114_p2), 1047559   ;;  %vm322_vm10 = vcmask (!%p114_p2), 261120   ;;  %s3521_s6 = smov (!%p114_p2), 99   ;;  %s3522_s7 = smov (!%p114_p2), 100  }
   0xa   : > { %3348 = vrot.lane.b32.xlu1 (!%p114_p2), %v3337_v3, %s3518_s27  ;;  %s3523_s8 = smov (!%p114_p2), 101   ;;  %s3524_s11 = smov (!%p114_p2), 102   ;;  %vm2619_vm11 = vcmask (!%p114_p2), 7168   ;;  %vm2621_vm12 = vcmask (!%p114_p2), 15360   ;;  %vm2623_vm13 = vcmask (!%p114_p2), 23552   ;;  %vm2626_vm14 = vcmask (!%p114_p2), 39936  }
   0xb   : > { %s3525_s14 = smov (!%p114_p2), 103   ;;  %vm2628_vm15 = vcmask (!%p114_p2), 48128   ;;  %vm2630_vm0 = vcmask (!%p114_p2), 56320   ;;  %p140_p4 = scmp.lt.s32.totalorder (!%p114_p2), %s3547_s10, 1 }
   0xc   : > { %3343 = vrot.lane.b32.xlu0 (!%p114_p2), %v3342_v9, %s3515_s22 }
   0xd   : > { %s3941_s21 = smov (!%p135_p3, %s2703_s21), 15  ;;  %s3943_s10 = smov (!%p140_p4, %s3547_s10), 1 }
   0xe   : > { %s2704_s23 = sshll.u32 %s3941_s21, 3  ;;  %3353 = vrot.lane.b32.xlu1 %v3342_v9, %s3518_s27  ;;  %s2705_s17 = sshll.u32 %s3943_s10, 3 }
   0xf   : > { %s138_s26 = scalar_lea.vmem %s3937_s0, %s2704_s23  ;;  %s143_s20 = scalar_lea.vmem %s3939_s2, %s2705_s17 }
  0x10   : > { %v152_v11 = vld [vmem:[%s138_s26] sm:$0xff]  ;;  %v153_v12 = vld [vmem:[%s138_s26 + $0x8] sm:$0xff]  ;;  %v154_v13 = vld [vmem:[%s138_s26 + $0x10] sm:$0xff] }
  0x11   : > { %2880 = vmatprep.mubr.msk.f32.mxu0 %vm160_vm2, %v152_v11  ;;  %v155_v14 = vld [vmem:[%s138_s26 + $0x18] sm:$0xff]  ;;  %v156_v15 = vld [vmem:[%s138_s26 + $0x20] sm:$0xff]  ;;  %v157_v16 = vld [vmem:[%s138_s26 + $0x28] sm:$0xff] }
  0x12   : > { %2881 = vmatmul.mubr.msk.f32.vlgmr.msra.gmra.mrb[0].mxu0 %vm160_vm2, %v153_v12  ;;  %v158_v17 = vld [vmem:[%s138_s26 + $0x30] sm:$0xff]  ;;  %v159_v18 = vld [vmem:[%s138_s26 + $0x38] sm:$0xff] }
  0x13   : > { %2883 = vmatprep.mubr.msk.f32.mxu0 %vm160_vm2, %v154_v13 }
  0x16   : > { %2884 = vmatmul.mubr.msk.f32.gmra.mrb[2].mxu0 %vm160_vm2, %v155_v14 }
  0x17   : > { %2886 = vmatprep.mubr.msk.f32.mxu0 %vm160_vm2, %v156_v15 }
  0x1a   : > { %2887 = vmatmul.mubr.msk.f32.gmra.mrb[4].mxu0 %vm160_vm2, %v157_v16 }
  0x1b   : > { %2889 = vmatprep.mubr.msk.f32.mxu0 %vm160_vm2, %v158_v17 }
  0x1e   : > { %2890 = vmatmul.mubr.msk.f32.gmra.mrb[6].mxu0 %vm160_vm2, %v159_v18 }
  0x1f   : > { %2922 = vmatprep.mubr.msk.f32.mxu0 %vm3516_vm1, %v3517_v10 }
  0x7a   : > { %v3339_v19 = vpop.permute.xlu0 %3338 }
  0x7b   : > { %v3341_v20 = vunpack.i.h.bf16 %v3339_v19  ;;  %v3340_v21 = vunpack.i.l.bf16 %v3339_v19 }
  0x7c   : > { %v3349_v35 = vpop.permute.xlu1 %3348 }
  0x7d   : > { %v3590_v22 = vpack.c.bf16 %v3341_v20, %v3340_v21  ;;  %v3351_v36 = vunpack.i.h.bf16 %v3349_v35  ;;  %v3350_v37 = vunpack.i.l.bf16 %v3349_v35  ;;  %v3673_v35 = vld [vmem:[%s3938_s1 + $0x29] ss:$0 sm:$0xff] }
  0x7e   : > { %v3344_v23 = vpop.permute.xlu0 %3343 }
  0x7f   : > { %v3346_v24 = vunpack.i.h.bf16 %v3344_v23  ;;  %v3345_v25 = vunpack.i.l.bf16 %v3344_v23  ;;  %3169 = vmatpush3.bf16.msra.mxu1 %v3590_v22  ;;  %v3612_v38 = vpack.c.bf16 %v3351_v36, %v3350_v37 }
  0x80   : > { %3170 = vmatprep.subr.bf16.mxu1 %v3514_v6  ;;  %v3354_v39 = vpop.permute.xlu1 %3353 }
  0x81   : > { %v3594_v26 = vpack.c.bf16 %v3346_v24, %v3345_v25  ;;  %3181 = vmatpush3.bf16.msra.mxu0 %v3612_v38  ;;  %v3356_v40 = vunpack.i.h.bf16 %v3354_v39  ;;  %v3355_v41 = vunpack.i.l.bf16 %v3354_v39 }
  0x82   : > { %3182 = vmatprep.subr.bf16.mxu0 %v3514_v6 }
  0x83   : > { %3172 = vmatpush3.bf16.msra.mxu1 %v3594_v26  ;;  %v3616_v42 = vpack.c.bf16 %v3356_v40, %v3355_v41 }
  0x84   : > { %3173 = vmatprep.subr.bf16.mxu1 %v3514_v6 }
  0x85   : > { %3184 = vmatpush3.bf16.msra.mxu0 %v3616_v42 }
  0x86   : > { %2901 = vmatmul.mubr.f32.vlgmr.msra.gmra.mrb[0].mxu1 %v3517_v10  ;;  %3191 = vmatprep.subr.bf16.mxu0 %v3514_v6 }
  0x87   : > { %3175 = vmatpush3.bf16.msra.mxu1 %v3560_v4  ;;  %2911 = vmatprep.mubr.msk.f32.mxu1 %vm3516_vm1, %v3517_v10 }
  0x88   : > { %3176 = vmatprep.subr.bf16.mxu1 %v3514_v6 }
  0x8b   : > { %3178 = vmatpush3.bf16.msra.mxu1 %v3570_v8 }
  0x8c   : > { %3185 = vmatprep.subr.bf16.mxu1 %v3514_v6 }
  0x8e   : > { %2912 = vmatmul.mubr.f32.vlgmr.msra.gmra.mrb[2].mxu1 %v3517_v10 }
  0x8f   : > { %3187 = vmatpush3.bf16.msra.mxu1 %v3590_v22  ;;  %2933 = vmatprep.mubr.msk.f32.mxu1 %vm3516_vm1, %v3517_v10 }
  0x90   : > { %3188 = vmatprep.subr.bf16.mxu1 %v3514_v6 }
  0x93   : > { %3190 = vmatpush3.bf16.msra.mxu1 %v3594_v26 }
  0x94   : > { %3197 = vmatprep.subr.bf16.mxu1 %v3514_v6 }
  0xe5   : > { %v2882_v27 = vpop.f32.mrb[0].mxu0 }
  0xe6   : > { %v255_v28 = vpop.f32.mrb[1].mxu0  ;;  %v3625_v46 = vadd.f32 %v2882_v27, %v2715_v45 }
  0xe7   : > { %v3627_v47 = vadd.f32 %v2715_v45, %v255_v28 }
  0xe9   : > { %v2885_v29 = vpop.f32.mrb[2].mxu0 }
  0xea   : > { %v265_v30 = vpop.f32.mrb[3].mxu0  ;;  %v3629_v48 = vadd.f32 %v2885_v29, %v2715_v45 }
  0xeb   : > { %v3631_v49 = vadd.f32 %v2715_v45, %v265_v30 }
  0xed   : > { %v2888_v31 = vpop.f32.mrb[4].mxu0 }
  0xee   : > { %v275_v32 = vpop.f32.mrb[5].mxu0  ;;  %v3633_v50 = vadd.f32 %v2888_v31, %v2715_v45 }
  0xef   : > { %v3635_v51 = vadd.f32 %v2715_v45, %v275_v32 }
  0xf1   : > { %v2891_v33 = vpop.f32.mrb[6].mxu0 }
  0xf2   : > { %v285_v34 = vpop.f32.mrb[7].mxu0  ;;  %v3637_v52 = vadd.f32 %v2891_v33, %v2715_v45 }
  0xf3   : > { %v3639_v59 = vadd.f32 %v2715_v45, %v285_v34 }
 0x159   : > { %v3620_v43 = vpop.f32.mrb[0].mxu1 }
 0x15a   : > { %v2902_v44 = vpop.f32.mrb[1].mxu1 }
 0x161   : > { %v462_v53 = vpop.f32.mrb[2].mxu1 }
 0x162   : > { %v467_v54 = vrot.slane %v462_v53, 1  ;;  %v468_v55 = vrot.slane %v462_v53, 2  ;;  %v469_v56 = vrot.slane %v462_v53, 3  ;;  %v470_v57 = vrot.slane %v462_v53, 4  ;;  %v2913_v58 = vpop.f32.mrb[3].mxu1 }
 0x163   : > { %v471_v60 = vrot.slane %v462_v53, 5  ;;  %v472_v61 = vrot.slane %v462_v53, 6  ;;  %v482_v62 = vadd.f32 %v462_v53, %v3627_v47  ;;  %v473_v2 = vrot.slane %v462_v53, 7 }
 0x164   : > { %v483_v63 = vadd.f32 %v467_v54, %v3625_v46  ;;  %v484_v0 = vadd.f32 %v468_v55, %v3631_v49  ;;  %v485_v1 = vadd.f32 %v469_v56, %v3629_v48  ;;  %v486_v3 = vadd.f32 %v470_v57, %v3635_v51 }
 0x165   : > { %3357 = vtanh.f32 %v482_v62  ;;  %v487_v5 = vadd.f32 %v471_v60, %v3633_v50  ;;  %v488_v7 = vadd.f32 %v472_v61, %v3639_v59  ;;  %v489_v9 = vadd.f32 %v473_v2, %v3637_v52 }
 0x166   : > { %3359 = vtanh.f32 %v483_v63 }
 0x167   : > { %3361 = vtanh.f32 %v484_v0 }
 0x168   : > { %3363 = vtanh.f32 %v485_v1 }
 0x169   : > { %3365 = vtanh.f32 %v486_v3 }
 0x16a   : > { %3367 = vtanh.f32 %v487_v5 }
 0x16b   : > { %3369 = vtanh.f32 %v488_v7 }
 0x16c   : > { %3371 = vtanh.f32 %v489_v9 }
 0x16f   : > { %v3358_v11 = vpop.eup %3357 }
 0x170   : > { %v3360_v12 = vpop.eup %3359 }
 0x171   : > { %v3362_v13 = vpop.eup %3361  ;;  %v506_v14 = vrot.slane %v3360_v12, 7 }
 0x172   : > { %v3364_v15 = vpop.eup %3363  ;;  %v509_v16 = vrot.slane %v3362_v13, 6 }
 0x173   : > { %v3366_v17 = vpop.eup %3365  ;;  %v508_v18 = vsel %vm507_vm3, %v506_v14, %v3358_v11  ;;  %v512_v19 = vrot.slane %v3364_v15, 5 }
 0x174   : > { %v3368_v20 = vpop.eup %3367  ;;  %v511_v21 = vsel %vm510_vm4, %v509_v16, %v508_v18  ;;  %v515_v23 = vrot.slane %v3366_v17, 4 }
 0x175   : > { %v3370_v24 = vpop.eup %3369  ;;  %v514_v25 = vsel %vm513_vm5, %v512_v19, %v511_v21  ;;  %v518_v27 = vrot.slane %v3368_v20, 3 }
 0x176   : > { %v3372_v28 = vpop.eup %3371  ;;  %v517_v29 = vsel %vm516_vm6, %v515_v23, %v514_v25  ;;  %v521_v30 = vrot.slane %v3370_v24, 2 }
 0x177   : > { %v520_v31 = vsel %vm519_vm7, %v518_v27, %v517_v29  ;;  %v524_v32 = vrot.slane %v3372_v28, 1 }
 0x178   : > { %v523_v33 = vsel %vm522_vm8, %v521_v30, %v520_v31 }
 0x179   : > { %v526_v34 = vsel %vm525_vm9, %v524_v32, %v523_v33 }
 0x17a   : > { %2923 = vmatmul.mubr.msk.f32.vlgmr.msra.gmra.mrb[8].mxu0 %vm322_vm10, %v526_v34 }
 0x17b   : > { %3193 = vmatpush3.bf16.msra.mxu0 %v3560_v4  ;;  %2944 = vmatprep.mubr.msk.f32.mxu0 %vm3516_vm1, %v3517_v10 }
 0x17c   : > { %3194 = vmatprep.subr.bf16.mxu0 %v3514_v6 }
 0x17f   : > { %3196 = vmatpush3.bf16.msra.mxu0 %v3570_v8 }
 0x180   : > { %3203 = vmatprep.subr.bf16.mxu0 %v3514_v6 }
 0x182   : > { %2945 = vmatmul.mubr.msk.f32.vlgmr.msra.gmra.mrb[10].mxu0 %vm322_vm10, %v526_v34 }
 0x183   : > { %3205 = vmatpush3.bf16.msra.mxu0 %v3590_v22  ;;  %2966 = vmatprep.mubr.msk.f32.mxu0 %vm3516_vm1, %v3517_v10 }
 0x184   : > { %3206 = vmatprep.subr.bf16.mxu0 %v3514_v6 }
 0x187   : > { %3208 = vmatpush3.bf16.msra.mxu0 %v3594_v26 }
 0x188   : > { %3215 = vmatprep.subr.bf16.mxu0 %v3514_v6 }
 0x24d   : > { %v607_v36 = vpop.f32.mrb[8].mxu0 }
 0x24e   : > { %v608_v37 = vadd.f32 %v607_v36, %v3620_v43  ;;  %v2924_v39 = vpop.f32.mrb[9].mxu0 }
 0x250   : > { %v615_v40 = vadd.f32 %v3673_v35, %v608_v37 }
 0x252   : > { %3373 = vtanh.f32 %v615_v40 }
 0x255   : > { %v756_v41 = vpop.f32.mrb[10].mxu0 }
 0x256   : > { %v761_v44 = vrot.slane %v756_v41, 7  ;;  %v762_v45 = vrot.slane %v756_v41, 1  ;;  %v763_v53 = vrot.slane %v756_v41, 2  ;;  %v764_v54 = vrot.slane %v756_v41, 3  ;;  %v2946_v55 = vpop.f32.mrb[11].mxu0 }
 0x257   : > { %v765_v56 = vrot.slane %v756_v41, 4  ;;  %v777_v57 = vadd.f32 %v756_v41, %v3625_v46  ;;  %v766_v58 = vrot.slane %v756_v41, 5  ;;  %v767_v62 = vrot.slane %v756_v41, 6 }
 0x258   : > { %v776_v60 = vadd.f32 %v761_v44, %v3627_v47  ;;  %v778_v61 = vadd.f32 %v762_v45, %v3631_v49  ;;  %v779_v43 = vadd.f32 %v763_v53, %v3629_v48  ;;  %v780_v63 = vadd.f32 %v764_v54, %v3635_v51 }
 0x259   : > { %3375 = vtanh.f32 %v777_v57  ;;  %v781_v0 = vadd.f32 %v765_v56, %v3633_v50  ;;  %v782_v1 = vadd.f32 %v766_v58, %v3639_v59  ;;  %v783_v3 = vadd.f32 %v767_v62, %v3637_v52 }
 0x25a   : > { %3377 = vtanh.f32 %v776_v60 }
 0x25b   : > { %3379 = vtanh.f32 %v778_v61 }
 0x25c   : > { %v3374_v2 = vpop.eup %3373  ;;  %3381 = vtanh.f32 %v779_v43 }
 0x25d   : > { %2934 = vmatmul.mubr.msk.f32.vlgmr.msra.gmra.mrb[4].mxu1 %vm322_vm10, %v3374_v2  ;;  %3383 = vtanh.f32 %v780_v63 }
 0x25e   : > { %3199 = vmatpush3.bf16.msra.mxu1 %v3612_v38  ;;  %2955 = vmatprep.mubr.msk.f32.mxu1 %vm3516_vm1, %v3517_v10  ;;  %3385 = vtanh.f32 %v781_v0 }
 0x25f   : > { %3200 = vmatprep.subr.bf16.mxu1 %v3514_v6  ;;  %3387 = vtanh.f32 %v782_v1 }
 0x260   : > { %3389 = vtanh.f32 %v783_v3 }
 0x262   : > { %3202 = vmatpush3.bf16.msra.mxu1 %v3616_v42 }
 0x263   : > { %v3376_v5 = vpop.eup %3375  ;;  %3209 = vmatprep.subr.bf16.mxu1 %v3514_v6 }
 0x264   : > { %v3378_v7 = vpop.eup %3377 }
 0x265   : > { %v3380_v9 = vpop.eup %3379  ;;  %v800_v11 = vrot.slane %v3378_v7, 1 }
 0x266   : > { %v3382_v12 = vpop.eup %3381  ;;  %v802_v13 = vrot.slane %v3380_v9, 7 }
 0x267   : > { %v3384_v14 = vpop.eup %3383  ;;  %v801_v15 = vsel %vm507_vm3, %v3376_v5, %v800_v11  ;;  %v804_v16 = vrot.slane %v3382_v12, 6 }
 0x268   : > { %v3386_v17 = vpop.eup %3385  ;;  %v803_v18 = vsel %vm510_vm4, %v802_v13, %v801_v15  ;;  %v806_v19 = vrot.slane %v3384_v14, 5 }
 0x269   : > { %v3388_v20 = vpop.eup %3387  ;;  %v805_v21 = vsel %vm513_vm5, %v804_v16, %v803_v18  ;;  %v808_v23 = vrot.slane %v3386_v17, 4 }
 0x26a   : > { %v3390_v24 = vpop.eup %3389  ;;  %v807_v25 = vsel %vm516_vm6, %v806_v19, %v805_v21  ;;  %v810_v27 = vrot.slane %v3388_v20, 3 }
 0x26b   : > { %v809_v28 = vsel %vm519_vm7, %v808_v23, %v807_v25  ;;  %v812_v29 = vrot.slane %v3390_v24, 2 }
 0x26c   : > { %v811_v30 = vsel %vm522_vm8, %v810_v27, %v809_v28 }
 0x26d   : > { %v813_v31 = vsel %vm525_vm9, %v812_v29, %v811_v30 }
 0x26e   : > { %2956 = vmatmul.mubr.msk.f32.vlgmr.msra.gmra.mrb[6].mxu1 %vm322_vm10, %v813_v31 }
 0x26f   : > { %3211 = vmatpush3.bf16.msra.mxu1 %v3560_v4  ;;  %2977 = vmatprep.mubr.msk.f32.mxu1 %vm3516_vm1, %v3517_v10 }
 0x270   : > { %3212 = vmatprep.subr.bf16.mxu1 %v3514_v6 }
 0x273   : > { %3214 = vmatpush3.bf16.msra.mxu1 %v3570_v8 }
 0x274   : > { %3221 = vmatprep.subr.bf16.mxu1 %v3514_v6 }
 0x276   : > { %2978 = vmatmul.mubr.msk.f32.vlgmr.msra.gmra.mrb[8].mxu1 %vm322_vm10, %v813_v31 }
 0x277   : > { %3223 = vmatpush3.bf16.msra.mxu1 %v3590_v22  ;;  %2999 = vmatprep.mubr.msk.f32.mxu1 %vm3516_vm1, %v3517_v10 }
 0x278   : > { %3224 = vmatprep.subr.bf16.mxu1 %v3514_v6 }
 0x27b   : > { %3226 = vmatpush3.bf16.msra.mxu1 %v3594_v26 }
 0x27c   : > { %3233 = vmatprep.subr.bf16.mxu1 %v3514_v6 }
 0x330   : > { %v686_v32 = vpop.f32.mrb[4].mxu1 }
 0x331   : > { %2588 = vrot.lane.b32.xlu0 %v686_v32, %s3518_s27  ;;  %v2935_v33 = vpop.f32.mrb[5].mxu1 }
 0x341   : > { %v882_v34 = vpop.f32.mrb[6].mxu1 }
 0x342   : > { %v883_v36 = vadd.f32 %v882_v34, %v686_v32  ;;  %v2957_v37 = vpop.f32.mrb[7].mxu1 }
 0x344   : > { %v886_v39 = vadd.f32 %v3673_v35, %v883_v36 }
 0x346   : > { %3391 = vtanh.f32 %v886_v39 }
 0x349   : > { %v1027_v40 = vpop.f32.mrb[8].mxu1 }
 0x34a   : > { %v1032_v41 = vrot.slane %v1027_v40, 6  ;;  %v1033_v44 = vrot.slane %v1027_v40, 7  ;;  %v1034_v45 = vrot.slane %v1027_v40, 1  ;;  %v1035_v53 = vrot.slane %v1027_v40, 2  ;;  %v2979_v54 = vpop.f32.mrb[9].mxu1 }
 0x34b   : > { %v1036_v55 = vrot.slane %v1027_v40, 3  ;;  %v1049_v56 = vadd.f32 %v1027_v40, %v3631_v49  ;;  %v1037_v57 = vrot.slane %v1027_v40, 4  ;;  %v1038_v43 = vrot.slane %v1027_v40, 5 }
 0x34c   : > { %v1047_v58 = vadd.f32 %v1032_v41, %v3627_v47  ;;  %v1048_v60 = vadd.f32 %v1033_v44, %v3625_v46  ;;  %v1050_v61 = vadd.f32 %v1034_v45, %v3629_v48  ;;  %v1051_v62 = vadd.f32 %v1035_v53, %v3635_v51 }
 0x34d   : > { %3393 = vtanh.f32 %v1049_v56  ;;  %v1052_v63 = vadd.f32 %v1036_v55, %v3633_v50  ;;  %v1053_v0 = vadd.f32 %v1037_v57, %v3639_v59  ;;  %v1054_v2 = vadd.f32 %v1038_v43, %v3637_v52 }
 0x34e   : > { %3395 = vtanh.f32 %v1047_v58 }
 0x34f   : > { %3397 = vtanh.f32 %v1048_v60 }
 0x350   : > { %v3392_v1 = vpop.eup %3391  ;;  %3399 = vtanh.f32 %v1050_v61 }
 0x351   : > { %2967 = vmatmul.mubr.msk.f32.vlgmr.msra.gmra.mrb[12].mxu0 %vm322_vm10, %v3392_v1  ;;  %3401 = vtanh.f32 %v1051_v62 }
 0x352   : > { %3217 = vmatpush3.bf16.msra.mxu0 %v3612_v38  ;;  %2988 = vmatprep.mubr.msk.f32.mxu0 %vm3516_vm1, %v3517_v10  ;;  %3403 = vtanh.f32 %v1052_v63 }
 0x353   : > { %3218 = vmatprep.subr.bf16.mxu0 %v3514_v6  ;;  %3405 = vtanh.f32 %v1053_v0 }
 0x354   : > { %3407 = vtanh.f32 %v1054_v2 }
 0x356   : > { %3220 = vmatpush3.bf16.msra.mxu0 %v3616_v42 }
 0x357   : > { %v3394_v3 = vpop.eup %3393  ;;  %3227 = vmatprep.subr.bf16.mxu0 %v3514_v6 }
 0x358   : > { %v3396_v5 = vpop.eup %3395 }
 0x359   : > { %v3398_v7 = vpop.eup %3397  ;;  %v1071_v9 = vrot.slane %v3396_v5, 2 }
 0x35a   : > { %v3400_v11 = vpop.eup %3399  ;;  %v1072_v12 = vrot.slane %v3398_v7, 1 }
 0x35b   : > { %v3402_v13 = vpop.eup %3401  ;;  %v1075_v16 = vrot.slane %v3400_v11, 7 }
 0x35c   : > { %v3404_v14 = vpop.eup %3403  ;;  %v1073_v15 = vsel %vm507_vm3, %v1072_v12, %v1071_v9  ;;  %v1077_v19 = vrot.slane %v3402_v13, 6 }
 0x35d   : > { %v3406_v17 = vpop.eup %3405  ;;  %v1074_v18 = vsel %vm510_vm4, %v3394_v3, %v1073_v15  ;;  %v1079_v23 = vrot.slane %v3404_v14, 5 }
 0x35e   : > { %v3408_v20 = vpop.eup %3407  ;;  %v1076_v21 = vsel %vm513_vm5, %v1075_v16, %v1074_v18  ;;  %v1081_v25 = vrot.slane %v3406_v17, 4 }
 0x35f   : > { %v1078_v24 = vsel %vm516_vm6, %v1077_v19, %v1076_v21  ;;  %v1083_v28 = vrot.slane %v3408_v20, 3 }
 0x360   : > { %v1080_v27 = vsel %vm519_vm7, %v1079_v23, %v1078_v24 }
 0x361   : > { %v1082_v29 = vsel %vm522_vm8, %v1081_v25, %v1080_v27 }
 0x362   : > { %v1084_v30 = vsel %vm525_vm9, %v1083_v28, %v1082_v29 }
 0x363   : > { %2989 = vmatmul.mubr.msk.f32.vlgmr.msra.gmra.mrb[14].mxu0 %vm322_vm10, %v1084_v30 }
 0x364   : > { %3229 = vmatpush3.bf16.msra.mxu0 %v3560_v4  ;;  %3010 = vmatprep.mubr.msk.f32.mxu0 %vm3516_vm1, %v3517_v10 }
 0x365   : > { %3230 = vmatprep.subr.bf16.mxu0 %v3514_v6 }
 0x368   : > { %3232 = vmatpush3.bf16.msra.mxu0 %v3570_v8 }
 0x369   : > { %3239 = vmatprep.subr.bf16.mxu0 %v3514_v6 }
 0x36b   : > { %3011 = vmatmul.mubr.msk.f32.vlgmr.msra.gmra.mrb[16].mxu0 %vm322_vm10, %v1084_v30 }
 0x36c   : > { %3241 = vmatpush3.bf16.msra.mxu0 %v3590_v22  ;;  %3032 = vmatprep.mubr.msk.f32.mxu0 %vm3516_vm1, %v3517_v10 }
 0x36d   : > { %3242 = vmatprep.subr.bf16.mxu0 %v3514_v6 }
 0x370   : > { %3244 = vmatpush3.bf16.msra.mxu0 %v3594_v26 }
 0x371   : > { %3251 = vmatprep.subr.bf16.mxu0 %v3514_v6 }
 0x424   : > { %v957_v31 = vpop.f32.mrb[12].mxu0 }
 0x425   : > { %2592 = vrot.lane.b32.xlu1 %v957_v31, %s3519_s4  ;;  %v2968_v32 = vpop.f32.mrb[13].mxu0 }
 0x436   : > { %v1153_v33 = vpop.f32.mrb[14].mxu0 }
 0x437   : > { %v1154_v34 = vadd.f32 %v1153_v33, %v957_v31  ;;  %v2990_v36 = vpop.f32.mrb[15].mxu0 }
 0x439   : > { %v1157_v37 = vadd.f32 %v3673_v35, %v1154_v34 }
 0x43b   : > { %3409 = vtanh.f32 %v1157_v37 }
 0x43e   : > { %v1298_v39 = vpop.f32.mrb[16].mxu0 }
 0x43f   : > { %v1303_v40 = vrot.slane %v1298_v39, 5  ;;  %v1304_v41 = vrot.slane %v1298_v39, 6  ;;  %v1305_v44 = vrot.slane %v1298_v39, 7  ;;  %v1306_v45 = vrot.slane %v1298_v39, 1  ;;  %v3012_v53 = vpop.f32.mrb[17].mxu0 }
 0x440   : > { %v1307_v54 = vrot.slane %v1298_v39, 2  ;;  %v1321_v55 = vadd.f32 %v1298_v39, %v3629_v48  ;;  %v1308_v56 = vrot.slane %v1298_v39, 3  ;;  %v1309_v61 = vrot.slane %v1298_v39, 4 }
 0x441   : > { %v1318_v57 = vadd.f32 %v1303_v40, %v3627_v47  ;;  %v1319_v58 = vadd.f32 %v1304_v41, %v3625_v46  ;;  %v1320_v60 = vadd.f32 %v1305_v44, %v3631_v49  ;;  %v1322_v43 = vadd.f32 %v1306_v45, %v3635_v51 }
 0x442   : > { %3411 = vtanh.f32 %v1321_v55  ;;  %v1323_v62 = vadd.f32 %v1307_v54, %v3633_v50  ;;  %v1324_v63 = vadd.f32 %v1308_v56, %v3639_v59  ;;  %v1325_v1 = vadd.f32 %v1309_v61, %v3637_v52 }
 0x443   : > { %3413 = vtanh.f32 %v1318_v57 }
 0x444   : > { %3415 = vtanh.f32 %v1319_v58 }
 0x445   : > { %v3410_v0 = vpop.eup %3409  ;;  %3417 = vtanh.f32 %v1320_v60 }
 0x446   : > { %3000 = vmatmul.mubr.msk.f32.vlgmr.msra.gmra.mrb[10].mxu1 %vm322_vm10, %v3410_v0  ;;  %3419 = vtanh.f32 %v1322_v43 }
 0x447   : > { %3235 = vmatpush3.bf16.msra.mxu1 %v3612_v38  ;;  %3021 = vmatprep.mubr.msk.f32.mxu1 %vm3516_vm1, %v3517_v10  ;;  %3421 = vtanh.f32 %v1323_v62 }
 0x448   : > { %3236 = vmatprep.subr.bf16.mxu1 %v3514_v6  ;;  %3423 = vtanh.f32 %v1324_v63 }
 0x449   : > { %3425 = vtanh.f32 %v1325_v1 }
 0x44b   : > { %3238 = vmatpush3.bf16.msra.mxu1 %v3616_v42 }
 0x44c   : > { %v3412_v2 = vpop.eup %3411  ;;  %3245 = vmatprep.subr.bf16.mxu1 %v3514_v6 }
 0x44d   : > { %v3414_v3 = vpop.eup %3413 }
 0x44e   : > { %v3416_v5 = vpop.eup %3415  ;;  %v1342_v7 = vrot.slane %v3414_v3, 3 }
 0x44f   : > { %v3418_v9 = vpop.eup %3417  ;;  %v1343_v11 = vrot.slane %v3416_v5, 2 }
 0x450   : > { %v3420_v12 = vpop.eup %3419  ;;  %v1345_v13 = vrot.slane %v3418_v9, 1 }
 0x451   : > { %v3422_v14 = vpop.eup %3421  ;;  %v1344_v15 = vsel %vm507_vm3, %v1343_v11, %v1342_v7  ;;  %v1348_v18 = vrot.slane %v3420_v12, 7 }
 0x452   : > { %v3424_v16 = vpop.eup %3423  ;;  %v1346_v17 = vsel %vm510_vm4, %v1345_v13, %v1344_v15  ;;  %v1350_v21 = vrot.slane %v3422_v14, 6 }
 0x453   : > { %v3426_v19 = vpop.eup %3425  ;;  %v1347_v20 = vsel %vm513_vm5, %v3412_v2, %v1346_v17  ;;  %v1352_v24 = vrot.slane %v3424_v16, 5 }
 0x454   : > { %v1349_v23 = vsel %vm516_vm6, %v1348_v18, %v1347_v20  ;;  %v1354_v27 = vrot.slane %v3426_v19, 4 }
 0x455   : > { %v1351_v25 = vsel %vm519_vm7, %v1350_v21, %v1349_v23 }
 0x456   : > { %v1353_v28 = vsel %vm522_vm8, %v1352_v24, %v1351_v25 }
 0x457   : > { %v1355_v29 = vsel %vm525_vm9, %v1354_v27, %v1353_v28 }
 0x458   : > { %3022 = vmatmul.mubr.msk.f32.vlgmr.msra.gmra.mrb[12].mxu1 %vm322_vm10, %v1355_v29 }
 0x459   : > { %3247 = vmatpush3.bf16.msra.mxu1 %v3560_v4  ;;  %3043 = vmatprep.mubr.msk.f32.mxu1 %vm3516_vm1, %v3517_v10 }
 0x45a   : > { %3248 = vmatprep.subr.bf16.mxu1 %v3514_v6 }
 0x45d   : > { %3250 = vmatpush3.bf16.msra.mxu1 %v3570_v8 }
 0x45e   : > { %3257 = vmatprep.subr.bf16.mxu1 %v3514_v6 }
 0x460   : > { %3044 = vmatmul.mubr.msk.f32.vlgmr.msra.gmra.mrb[14].mxu1 %vm322_vm10, %v1355_v29 }
 0x461   : > { %3259 = vmatpush3.bf16.msra.mxu1 %v3590_v22  ;;  %3065 = vmatprep.mubr.msk.f32.mxu1 %vm3516_vm1, %v3517_v10 }
 0x462   : > { %3260 = vmatprep.subr.bf16.mxu1 %v3514_v6 }
 0x465   : > { %3262 = vmatpush3.bf16.msra.mxu1 %v3594_v26 }
 0x466   : > { %3269 = vmatprep.subr.bf16.mxu1 %v3514_v6 }
 0x519   : > { %v1228_v30 = vpop.f32.mrb[10].mxu1 }
 0x51a   : > { %2596 = vrot.lane.b32.xlu0 %v1228_v30, %s3520_s5  ;;  %v3001_v31 = vpop.f32.mrb[11].mxu1 }
 0x52b   : > { %v1424_v32 = vpop.f32.mrb[12].mxu1 }
 0x52c   : > { %v1425_v33 = vadd.f32 %v1424_v32, %v1228_v30  ;;  %v3023_v34 = vpop.f32.mrb[13].mxu1 }
 0x52e   : > { %v1428_v36 = vadd.f32 %v3673_v35, %v1425_v33 }
 0x530   : > { %3427 = vtanh.f32 %v1428_v36 }
 0x533   : > { %v1569_v37 = vpop.f32.mrb[14].mxu1 }
 0x534   : > { %v1574_v39 = vrot.slane %v1569_v37, 4  ;;  %v1575_v40 = vrot.slane %v1569_v37, 5  ;;  %v1576_v41 = vrot.slane %v1569_v37, 6  ;;  %v1577_v44 = vrot.slane %v1569_v37, 7  ;;  %v3045_v45 = vpop.f32.mrb[15].mxu1 }
 0x535   : > { %v1578_v53 = vrot.slane %v1569_v37, 1  ;;  %v1593_v54 = vadd.f32 %v1569_v37, %v3635_v51  ;;  %v1579_v55 = vrot.slane %v1569_v37, 2  ;;  %v1580_v60 = vrot.slane %v1569_v37, 3 }
 0x536   : > { %v1589_v56 = vadd.f32 %v1574_v39, %v3627_v47  ;;  %v1590_v57 = vadd.f32 %v1575_v40, %v3625_v46  ;;  %v1591_v58 = vadd.f32 %v1576_v41, %v3631_v49  ;;  %v1592_v61 = vadd.f32 %v1577_v44, %v3629_v48 }
 0x537   : > { %3429 = vtanh.f32 %v1593_v54  ;;  %v1594_v43 = vadd.f32 %v1578_v53, %v3633_v50  ;;  %v1595_v62 = vadd.f32 %v1579_v55, %v3639_v59  ;;  %v1596_v0 = vadd.f32 %v1580_v60, %v3637_v52 }
 0x538   : > { %3431 = vtanh.f32 %v1589_v56 }
 0x539   : > { %3433 = vtanh.f32 %v1590_v57 }
 0x53a   : > { %v3428_v63 = vpop.eup %3427  ;;  %3435 = vtanh.f32 %v1591_v58 }
 0x53b   : > { %3033 = vmatmul.mubr.msk.f32.vlgmr.msra.gmra.mrb[18].mxu0 %vm322_vm10, %v3428_v63  ;;  %3437 = vtanh.f32 %v1592_v61 }
 0x53c   : > { %3253 = vmatpush3.bf16.msra.mxu0 %v3612_v38  ;;  %3054 = vmatprep.mubr.msk.f32.mxu0 %vm3516_vm1, %v3517_v10  ;;  %3439 = vtanh.f32 %v1594_v43 }
 0x53d   : > { %3254 = vmatprep.subr.bf16.mxu0 %v3514_v6  ;;  %3441 = vtanh.f32 %v1595_v62 }
 0x53e   : > { %3443 = vtanh.f32 %v1596_v0 }
 0x540   : > { %3256 = vmatpush3.bf16.msra.mxu0 %v3616_v42 }
 0x541   : > { %v3430_v1 = vpop.eup %3429  ;;  %3263 = vmatprep.subr.bf16.mxu0 %v3514_v6 }
 0x542   : > { %v3432_v2 = vpop.eup %3431 }
 0x543   : > { %v3434_v3 = vpop.eup %3433  ;;  %v1613_v5 = vrot.slane %v3432_v2, 4 }
 0x544   : > { %v3436_v7 = vpop.eup %3435  ;;  %v1614_v9 = vrot.slane %v3434_v3, 3 }
 0x545   : > { %v3438_v11 = vpop.eup %3437  ;;  %v1616_v12 = vrot.slane %v3436_v7, 2 }
 0x546   : > { %v3440_v13 = vpop.eup %3439  ;;  %v1615_v14 = vsel %vm507_vm3, %v1614_v9, %v1613_v5  ;;  %v1618_v15 = vrot.slane %v3438_v11, 1 }
 0x547   : > { %v3442_v16 = vpop.eup %3441  ;;  %v1617_v17 = vsel %vm510_vm4, %v1616_v12, %v1615_v14  ;;  %v1621_v20 = vrot.slane %v3440_v13, 7 }
 0x548   : > { %v3444_v18 = vpop.eup %3443  ;;  %v1619_v19 = vsel %vm513_vm5, %v1618_v15, %v1617_v17  ;;  %v1623_v23 = vrot.slane %v3442_v16, 6 }
 0x549   : > { %v1620_v21 = vsel %vm516_vm6, %v3430_v1, %v1619_v19  ;;  %v1625_v25 = vrot.slane %v3444_v18, 5 }
 0x54a   : > { %v1622_v24 = vsel %vm519_vm7, %v1621_v20, %v1620_v21 }
 0x54b   : > { %v1624_v27 = vsel %vm522_vm8, %v1623_v23, %v1622_v24 }
 0x54c   : > { %v1626_v28 = vsel %vm525_vm9, %v1625_v25, %v1624_v27 }
 0x54d   : > { %3055 = vmatmul.mubr.msk.f32.vlgmr.msra.gmra.mrb[20].mxu0 %vm322_vm10, %v1626_v28 }
 0x54e   : > { %3265 = vmatpush3.bf16.msra.mxu0 %v3560_v4  ;;  %3076 = vmatprep.mubr.msk.f32.mxu0 %vm3516_vm1, %v3517_v10 }
 0x54f   : > { %3266 = vmatprep.subr.bf16.mxu0 %v3514_v6 }
 0x552   : > { %3268 = vmatpush3.bf16.msra.mxu0 %v3570_v8 }
 0x553   : > { %3275 = vmatprep.subr.bf16.mxu0 %v3514_v6 }
 0x555   : > { %3077 = vmatmul.mubr.msk.f32.vlgmr.msra.gmra.mrb[22].mxu0 %vm322_vm10, %v1626_v28 }
 0x556   : > { %3277 = vmatpush3.bf16.msra.mxu0 %v3590_v22  ;;  %3098 = vmatprep.mubr.msk.f32.mxu0 %vm3516_vm1, %v3517_v10 }
 0x557   : > { %3278 = vmatprep.subr.bf16.mxu0 %v3514_v6 }
 0x55a   : > { %3280 = vmatpush3.bf16.msra.mxu0 %v3594_v26 }
 0x55b   : > { %3287 = vmatprep.subr.bf16.mxu0 %v3514_v6 }
 0x60e   : > { %v1499_v29 = vpop.f32.mrb[18].mxu0 }
 0x60f   : > { %2600 = vrot.lane.b32.xlu1 %v1499_v29, %s3521_s6  ;;  %v3034_v30 = vpop.f32.mrb[19].mxu0 }
 0x620   : > { %v1695_v31 = vpop.f32.mrb[20].mxu0 }
 0x621   : > { %v1696_v32 = vadd.f32 %v1695_v31, %v1499_v29  ;;  %v3056_v33 = vpop.f32.mrb[21].mxu0 }
 0x623   : > { %v1699_v34 = vadd.f32 %v3673_v35, %v1696_v32 }
 0x625   : > { %3445 = vtanh.f32 %v1699_v34 }
 0x628   : > { %v1840_v36 = vpop.f32.mrb[22].mxu0 }
 0x629   : > { %v1845_v37 = vrot.slane %v1840_v36, 3  ;;  %v1846_v39 = vrot.slane %v1840_v36, 4  ;;  %v1847_v40 = vrot.slane %v1840_v36, 5  ;;  %v1848_v41 = vrot.slane %v1840_v36, 6  ;;  %v3078_v44 = vpop.f32.mrb[23].mxu0 }
 0x62a   : > { %v1849_v45 = vrot.slane %v1840_v36, 7  ;;  %v1850_v53 = vrot.slane %v1840_v36, 1  ;;  %v1851_v57 = vrot.slane %v1840_v36, 2  ;;  %v1865_v63 = vadd.f32 %v1840_v36, %v3633_v50 }
 0x62b   : > { %v1860_v54 = vadd.f32 %v1845_v37, %v3627_v47  ;;  %v1861_v55 = vadd.f32 %v1846_v39, %v3625_v46  ;;  %v1862_v56 = vadd.f32 %v1847_v40, %v3631_v49  ;;  %v1863_v58 = vadd.f32 %v1848_v41, %v3629_v48 }
 0x62c   : > { %v1864_v60 = vadd.f32 %v1849_v45, %v3635_v51  ;;  %v1866_v61 = vadd.f32 %v1850_v53, %v3639_v59  ;;  %v1867_v62 = vadd.f32 %v1851_v57, %v3637_v52 }
 0x62d   : > { %3447 = vtanh.f32 %v1860_v54 }
 0x62e   : > { %3449 = vtanh.f32 %v1861_v55 }
 0x62f   : > { %v3446_v43 = vpop.eup %3445  ;;  %3451 = vtanh.f32 %v1862_v56 }
 0x630   : > { %3066 = vmatmul.mubr.msk.f32.vlgmr.msra.gmra.mrb[16].mxu1 %vm322_vm10, %v3446_v43  ;;  %3453 = vtanh.f32 %v1863_v58 }
 0x631   : > { %3271 = vmatpush3.bf16.msra.mxu1 %v3612_v38  ;;  %3087 = vmatprep.mubr.msk.f32.mxu1 %vm3516_vm1, %v3517_v10  ;;  %3455 = vtanh.f32 %v1864_v60 }
 0x632   : > { %3272 = vmatprep.subr.bf16.mxu1 %v3514_v6  ;;  %3457 = vtanh.f32 %v1866_v61 }
 0x633   : > { %3459 = vtanh.f32 %v1867_v62 }
 0x634   : > { %3461 = vtanh.f32 %v1865_v63 }
 0x635   : > { %3274 = vmatpush3.bf16.msra.mxu1 %v3616_v42 }
 0x636   : > { %3281 = vmatprep.subr.bf16.mxu1 %v3514_v6 }
 0x637   : > { %v3448_v0 = vpop.eup %3447 }
 0x638   : > { %v3450_v1 = vpop.eup %3449  ;;  %v1884_v2 = vrot.slane %v3448_v0, 5 }
 0x639   : > { %v3452_v3 = vpop.eup %3451  ;;  %v1885_v5 = vrot.slane %v3450_v1, 4 }
 0x63a   : > { %v3454_v7 = vpop.eup %3453  ;;  %v1887_v9 = vrot.slane %v3452_v3, 3 }
 0x63b   : > { %v3456_v11 = vpop.eup %3455  ;;  %v1886_v12 = vsel %vm507_vm3, %v1885_v5, %v1884_v2  ;;  %v1889_v13 = vrot.slane %v3454_v7, 2 }
 0x63c   : > { %v3458_v14 = vpop.eup %3457  ;;  %v1888_v15 = vsel %vm510_vm4, %v1887_v9, %v1886_v12  ;;  %v1891_v16 = vrot.slane %v3456_v11, 1 }
 0x63d   : > { %v3460_v17 = vpop.eup %3459  ;;  %v1890_v18 = vsel %vm513_vm5, %v1889_v13, %v1888_v15  ;;  %v1894_v21 = vrot.slane %v3458_v14, 7 }
 0x63e   : > { %v3462_v19 = vpop.eup %3461  ;;  %v1892_v20 = vsel %vm516_vm6, %v1891_v16, %v1890_v18  ;;  %v1896_v24 = vrot.slane %v3460_v17, 6 }
 0x63f   : > { %v1893_v23 = vsel %vm519_vm7, %v3462_v19, %v1892_v20 }
 0x640   : > { %v1895_v25 = vsel %vm522_vm8, %v1894_v21, %v1893_v23 }
 0x641   : > { %v1897_v27 = vsel %vm525_vm9, %v1896_v24, %v1895_v25 }
 0x642   : > { %3088 = vmatmul.mubr.msk.f32.vlgmr.msra.gmra.mrb[18].mxu1 %vm322_vm10, %v1897_v27 }
 0x643   : > { %3283 = vmatpush3.bf16.msra.mxu1 %v3560_v4  ;;  %3109 = vmatprep.mubr.msk.f32.mxu1 %vm3516_vm1, %v3517_v10 }
 0x644   : > { %3284 = vmatprep.subr.bf16.mxu1 %v3514_v6 }
 0x647   : > { %3286 = vmatpush3.bf16.msra.mxu1 %v3570_v8 }
 0x648   : > { %3293 = vmatprep.subr.bf16.mxu1 %v3514_v6 }
 0x64a   : > { %3110 = vmatmul.mubr.msk.f32.vlgmr.msra.gmra.mrb[20].mxu1 %vm322_vm10, %v1897_v27 }
 0x64b   : > { %3295 = vmatpush3.bf16.msra.mxu1 %v3590_v22  ;;  %3131 = vmatprep.mubr.msk.f32.mxu1 %vm3516_vm1, %v3517_v10 }
 0x64c   : > { %3296 = vmatprep.subr.bf16.mxu1 %v3514_v6 }
 0x64f   : > { %3298 = vmatpush3.bf16.msra.mxu1 %v3594_v26 }
 0x650   : > { %3305 = vmatprep.subr.bf16.mxu1 %v3514_v6 }
 0x703   : > { %v1770_v28 = vpop.f32.mrb[16].mxu1 }
 0x704   : > { %2604 = vrot.lane.b32.xlu0 %v1770_v28, %s3522_s7  ;;  %v3067_v29 = vpop.f32.mrb[17].mxu1 }
 0x715   : > { %v1966_v30 = vpop.f32.mrb[18].mxu1 }
 0x716   : > { %v1967_v31 = vadd.f32 %v1966_v30, %v1770_v28  ;;  %v3089_v32 = vpop.f32.mrb[19].mxu1 }
 0x718   : > { %v1970_v33 = vadd.f32 %v3673_v35, %v1967_v31 }
 0x71a   : > { %3463 = vtanh.f32 %v1970_v33 }
 0x71d   : > { %v2111_v34 = vpop.f32.mrb[20].mxu1 }
 0x71e   : > { %v2116_v36 = vrot.slane %v2111_v34, 2  ;;  %v2117_v37 = vrot.slane %v2111_v34, 3  ;;  %v2118_v39 = vrot.slane %v2111_v34, 4  ;;  %v2119_v40 = vrot.slane %v2111_v34, 5  ;;  %v3111_v41 = vpop.f32.mrb[21].mxu1 }
 0x71f   : > { %v2120_v44 = vrot.slane %v2111_v34, 6  ;;  %v2121_v45 = vrot.slane %v2111_v34, 7  ;;  %v2122_v56 = vrot.slane %v2111_v34, 1  ;;  %v2137_v62 = vadd.f32 %v2111_v34, %v3639_v59 }
 0x720   : > { %v2131_v53 = vadd.f32 %v2116_v36, %v3627_v47  ;;  %v2132_v54 = vadd.f32 %v2117_v37, %v3625_v46  ;;  %v2133_v55 = vadd.f32 %v2118_v39, %v3631_v49  ;;  %v2134_v57 = vadd.f32 %v2119_v40, %v3629_v48 }
 0x721   : > { %v2135_v58 = vadd.f32 %v2120_v44, %v3635_v51  ;;  %v2136_v60 = vadd.f32 %v2121_v45, %v3633_v50  ;;  %v2138_v43 = vadd.f32 %v2122_v56, %v3637_v52 }
 0x722   : > { %3465 = vtanh.f32 %v2131_v53 }
 0x723   : > { %3467 = vtanh.f32 %v2132_v54 }
 0x724   : > { %v3464_v61 = vpop.eup %3463  ;;  %3469 = vtanh.f32 %v2133_v55 }
 0x725   : > { %3099 = vmatmul.mubr.msk.f32.vlgmr.msra.gmra.mrb[24].mxu0 %vm322_vm10, %v3464_v61  ;;  %3471 = vtanh.f32 %v2134_v57 }
 0x726   : > { %3289 = vmatpush3.bf16.msra.mxu0 %v3612_v38  ;;  %3120 = vmatprep.mubr.msk.f32.mxu0 %vm3516_vm1, %v3517_v10  ;;  %3473 = vtanh.f32 %v2135_v58 }
 0x727   : > { %3290 = vmatprep.subr.bf16.mxu0 %v3514_v6  ;;  %3475 = vtanh.f32 %v2136_v60 }
 0x728   : > { %3477 = vtanh.f32 %v2138_v43 }
 0x729   : > { %3479 = vtanh.f32 %v2137_v62 }
 0x72a   : > { %3292 = vmatpush3.bf16.msra.mxu0 %v3616_v42 }
 0x72b   : > { %3299 = vmatprep.subr.bf16.mxu0 %v3514_v6 }
 0x72c   : > { %v3466_v63 = vpop.eup %3465 }
 0x72d   : > { %v3468_v0 = vpop.eup %3467  ;;  %v2155_v1 = vrot.slane %v3466_v63, 6 }
 0x72e   : > { %v3470_v2 = vpop.eup %3469  ;;  %v2156_v3 = vrot.slane %v3468_v0, 5 }
 0x72f   : > { %v3472_v5 = vpop.eup %3471  ;;  %v2158_v7 = vrot.slane %v3470_v2, 4 }
 0x730   : > { %v3474_v9 = vpop.eup %3473  ;;  %v2157_v11 = vsel %vm507_vm3, %v2156_v3, %v2155_v1  ;;  %v2160_v12 = vrot.slane %v3472_v5, 3 }
 0x731   : > { %v3476_v13 = vpop.eup %3475  ;;  %v2159_v14 = vsel %vm510_vm4, %v2158_v7, %v2157_v11  ;;  %v2162_v15 = vrot.slane %v3474_v9, 2 }
 0x732   : > { %v3478_v16 = vpop.eup %3477  ;;  %v2161_v17 = vsel %vm513_vm5, %v2160_v12, %v2159_v14  ;;  %v2164_v18 = vrot.slane %v3476_v13, 1  ;;  %v3505_v12 = vld [vmem:[%s3938_s1 + $0x29] ss:$0 sm:$0xff] }
 0x733   : > { %v2163_v19 = vsel %vm516_vm6, %v2162_v15, %v2161_v17  ;;  %v3480_v20 = vpop.eup %3479  ;;  %v2167_v23 = vrot.slane %v3478_v16, 7  ;;  %v2589_v17 = vpop.permute.xlu0 %2588 }
 0x734   : > { %v2165_v21 = vsel %vm519_vm7, %v2164_v18, %v2163_v19  ;;  %v2593_v18 = vpop.permute.xlu1 %2592 }
 0x735   : > { %v2166_v24 = vsel %vm522_vm8, %v3480_v20, %v2165_v21 }
 0x736   : > { %v2168_v25 = vsel %vm525_vm9, %v2167_v23, %v2166_v24  ;;  %v2620_v23 = vsel %vm2619_vm11, %v2589_v17, %v2593_v18 }
 0x737   : > { %3121 = vmatmul.mubr.msk.f32.vlgmr.msra.gmra.mrb[26].mxu0 %vm322_vm10, %v2168_v25  ;;  %v2597_v19 = vpop.permute.xlu0 %2596 }
 0x738   : > { %3301 = vmatpush3.bf16.msra.mxu0 %v3560_v4  ;;  %3142 = vmatprep.mubr.msk.f32.mxu0 %vm3516_vm1, %v3517_v10  ;;  %v2601_v20 = vpop.permute.xlu1 %2600  ;;  %v2622_v24 = vsel %vm2621_vm12, %v2620_v23, %v2597_v19 }
 0x739   : > { %3302 = vmatprep.subr.bf16.mxu0 %v3514_v6 }
 0x73c   : > { %3304 = vmatpush3.bf16.msra.mxu0 %v3570_v8 }
 0x73d   : > { %3311 = vmatprep.subr.bf16.mxu0 %v3514_v6 }
 0x73f   : > { %3143 = vmatmul.mubr.msk.f32.vlgmr.msra.gmra.mrb[28].mxu0 %vm322_vm10, %v2168_v25 }
 0x740   : > { %3313 = vmatpush3.bf16.msra.mxu0 %v3590_v22  ;;  %3164 = vmatprep.mubr.msk.f32.mxu0 %vm3516_vm1, %v3517_v10 }
 0x741   : > { %3314 = vmatprep.subr.bf16.mxu0 %v3514_v6 }
 0x744   : > { %3316 = vmatpush3.bf16.msra.mxu0 %v3594_v26 }
 0x776   : > { %v2605_v21 = vpop.permute.xlu0 %2604 }
 0x7f8   : > { %v2041_v4 = vpop.f32.mrb[24].mxu0 }
 0x7f9   : > { %2608 = vrot.lane.b32.xlu1 %v2041_v4, %s3523_s8  ;;  %v3100_v27 = vpop.f32.mrb[25].mxu0 }
 0x80a   : > { %v2237_v28 = vpop.f32.mrb[26].mxu0 }
 0x80b   : > { %v2238_v29 = vadd.f32 %v2237_v28, %v2041_v4  ;;  %v3122_v8 = vpop.f32.mrb[27].mxu0  ;;  %v2624_v4 = vsel %vm2623_vm13, %v2622_v24, %v2601_v20 }
 0x80c   : > { %v2625_v28 = vsel %vm160_vm2, %v2624_v4, %v2605_v21  ;;  %v2740_v8 = vld [vmem:[%s3938_s1 + $0x2a] ss:$0 sm:$0xff] }
 0x80d   : > { %v2241_v30 = vadd.f32 %v3673_v35, %v2238_v29 }
 0x80f   : > { %3481 = vtanh.f32 %v2241_v30 }
 0x812   : > { %v2382_v31 = vpop.f32.mrb[28].mxu0 }
 0x813   : > { %v2387_v32 = vrot.slane %v2382_v31, 1  ;;  %v2388_v22 = vrot.slane %v2382_v31, 2  ;;  %v2389_v33 = vrot.slane %v2382_v31, 3  ;;  %v2390_v34 = vrot.slane %v2382_v31, 4  ;;  %v3144_v36 = vpop.f32.mrb[29].mxu0 }
 0x814   : > { %v2391_v37 = vrot.slane %v2382_v31, 5  ;;  %v2392_v39 = vrot.slane %v2382_v31, 6  ;;  %v2393_v44 = vrot.slane %v2382_v31, 7 }
 0x815   : > { %v2402_v26 = vadd.f32 %v2387_v32, %v3627_v47  ;;  %v2403_v40 = vadd.f32 %v2388_v22, %v3625_v46  ;;  %v2404_v41 = vadd.f32 %v2389_v33, %v3631_v49  ;;  %v2405_v45 = vadd.f32 %v2390_v34, %v3629_v48 }
 0x816   : > { %v2406_v35 = vadd.f32 %v2391_v37, %v3635_v51  ;;  %v2407_v53 = vadd.f32 %v2392_v39, %v3633_v50  ;;  %v2408_v55 = vadd.f32 %v2393_v44, %v3639_v59  ;;  %v2409_v46 = vadd.f32 %v2382_v31, %v3637_v52 }
 0x817   : > { %3483 = vtanh.f32 %v2402_v26 }
 0x818   : > { %3485 = vtanh.f32 %v2403_v40 }
 0x819   : > { %v3482_v54 = vpop.eup %3481  ;;  %3487 = vtanh.f32 %v2404_v41 }
 0x81a   : > { %3132 = vmatmul.mubr.msk.f32.vlgmr.msra.gmra.mrb[22].mxu1 %vm322_vm10, %v3482_v54  ;;  %3489 = vtanh.f32 %v2405_v45 }
 0x81b   : > { %3307 = vmatpush3.bf16.msra.mxu1 %v3612_v38  ;;  %3153 = vmatprep.mubr.msk.f32.mxu1 %vm3516_vm1, %v3517_v10  ;;  %3491 = vtanh.f32 %v2406_v35  ;;  %vm2643_vm1 = vcmask 64512  }
 0x81c   : > { %3308 = vmatprep.subr.bf16.mxu1 %v3514_v6  ;;  %3493 = vtanh.f32 %v2407_v53 }
 0x81d   : > { %3495 = vtanh.f32 %v2408_v55 }
 0x81e   : > { %3497 = vtanh.f32 %v2409_v46 }
 0x81f   : > { %3310 = vmatpush3.bf16.msra.mxu1 %v3616_v42 }
 0x821   : > { %v3484_v47 = vpop.eup %3483 }
 0x822   : > { %v3486_v48 = vpop.eup %3485  ;;  %v2426_v49 = vrot.slane %v3484_v47, 7 }
 0x823   : > { %v3488_v50 = vpop.eup %3487  ;;  %v2427_v51 = vrot.slane %v3486_v48, 6 }
 0x824   : > { %v3490_v59 = vpop.eup %3489  ;;  %v2429_v38 = vrot.slane %v3488_v50, 5 }
 0x825   : > { %v3492_v56 = vpop.eup %3491  ;;  %v2428_v10 = vsel %vm507_vm3, %v2427_v51, %v2426_v49  ;;  %v2431_v57 = vrot.slane %v3490_v59, 4 }
 0x826   : > { %v3494_v58 = vpop.eup %3493  ;;  %v2430_v52 = vsel %vm510_vm4, %v2429_v38, %v2428_v10  ;;  %v2433_v6 = vrot.slane %v3492_v56, 3 }
 0x827   : > { %v3496_v60 = vpop.eup %3495  ;;  %v2432_v61 = vsel %vm513_vm5, %v2431_v57, %v2430_v52  ;;  %v2435_v42 = vrot.slane %v3494_v58, 2 }
 0x828   : > { %v2434_v43 = vsel %vm516_vm6, %v2433_v6, %v2432_v61  ;;  %v2437_v62 = vrot.slane %v3496_v60, 1  ;;  %v3498_v0 = vpop.eup %3497 }
 0x829   : > { %v2436_v63 = vsel %vm519_vm7, %v2435_v42, %v2434_v43 }
 0x82a   : > { %v2438_v1 = vsel %vm522_vm8, %v2437_v62, %v2436_v63 }
 0x82b   : > { %v2439_v2 = vsel %vm525_vm9, %v3498_v0, %v2438_v1 }
 0x82c   : > { %3154 = vmatmul.mubr.msk.f32.vlgmr.msra.gmra.mrb[24].mxu1 %vm322_vm10, %v2439_v2 }
 0x86b   : > { %v2609_v25 = vpop.permute.xlu1 %2608 }
 0x86c   : > { %v2627_v29 = vsel %vm2626_vm14, %v2625_v28, %v2609_v25 }
 0x8ed   : > { %v2312_v3 = vpop.f32.mrb[22].mxu1 }
 0x8ee   : > { %2612 = vrot.lane.b32.xlu0 %v2312_v3, %s3524_s11  ;;  %v3133_v5 = vpop.f32.mrb[23].mxu1 }
 0x8ff   : > { %v2508_v7 = vpop.f32.mrb[24].mxu1 }
 0x900   : > { %v2509_v9 = vadd.f32 %v2508_v7, %v2312_v3  ;;  %v3155_v11 = vpop.f32.mrb[25].mxu1 }
 0x902   : > { %v2512_v13 = vadd.f32 %v3505_v12, %v2509_v9 }
 0x904   : > { %3499 = vtanh.f32 %v2512_v13 }
 0x90e   : > { %v3500_v14 = vpop.eup %3499 }
 0x90f   : > { %3165 = vmatmul.mubr.msk.f32.vlgmr.msra.gmra.mrb[30].mxu0 %vm322_vm10, %v3500_v14 }
 0x960   : > { %v2613_v27 = vpop.permute.xlu0 %2612 }
 0x961   : > { %v2629_v30 = vsel %vm2628_vm15, %v2627_v29, %v2613_v27 }
 0x9e2   : > { %v2583_v15 = vpop.f32.mrb[30].mxu0 }
 0x9e3   : > { %2616 = vrot.lane.b32.xlu1 %v2583_v15, %s3525_s14  ;;  %v3166_v16 = vpop.f32.mrb[31].mxu0 }
 0xa55   : > { %v2617_v31 = vpop.permute.xlu1 %2616 }
 0xa56   : > { %v2631_v32 = vsel %vm2630_vm0, %v2629_v30, %v2617_v31 }
 0xa57   : > { %v2636_v22 = vadd.f32 %v2740_v8, %v2631_v32 }
 0xa59   : > { %v2741_v33 = vmul.f32 -1.442695, %v2636_v22 }
 0xa5b   : > { %3501 = vpow2.f32 %v2741_v33 }
 0xa65   : > { %v3502_v34 = vpop.eup %3501 }
 0xa66   : > { %v2640_v36 = vadd.f32 1.0, %v3502_v34 }
 0xa68   : > { %3503 = vrcp.f32 %v2640_v36 }
 0xa72   : > { %v3504_v37 = vpop.eup %3503 }
 0xa73   : > { %2644 = vst.msk [vmem:[%s143_s20] sm:$0xff] %vm2643_vm1, %v3504_v37 }
 0xa74 PF: > { %s12_s9 = sadd.s32 1, %s3512_s9  }
 0xa75   : > { %p9_p5 = scmp.ge.s32.totalorder %s12_s9, 4  }
 0xa77   :  { %11 = sbr.rel (!%p9_p5) target bundleno = 1 (0x1), region = 58 }

</bundles_post_ra>
